<compile_context>
chip_gen: v7x
topology: tpu7x:2x2x1
jax: 0.10.0
libtpu: 0.0.40
codegen_flags: <defaults>
</compile_context>

<pallas_src>
import jax
import jax.numpy as jnp
from jax import lax
from jax.experimental import pallas as pl
from jax.experimental.pallas import tpu as pltpu


_NEG = -1e30  # large negative instead of -inf: keeps lens == 0 rows NaN-free


# ----------------------------------------------------------------------------
# Kernel
# ----------------------------------------------------------------------------
def ssrm_kernel(tmax_ref, w_ref, lens_ref, emb_ref, feat_ref, wih_ref, whh_ref,
                bgi_ref, bhn_ref, wb_ref, out_ref,
                gi_ref, p_ref, h_ref, num_ref, m_ref, den_ref):
    T, B, D = emb_ref.shape            # B = batch tile (mult of 8), D padded to 128
    t_hi = tmax_ref[pl.program_id(0)]  # per-tile max sequence length (<= T)

    feat = feat_ref[...]               # (B, D)
    lens = lens_ref[...]               # (B, 1) int32
    wih = wih_ref[...]                 # (D, 3D)   gate order [r | z | n]
    whh = whh_ref[...]                 # (D, 3D)
    bgi = bgi_ref[...]                 # (1, 3D)   b_ih + [b_hr, b_hz, 0]
    bhn = bhn_ref[...]                 # (1, D)    b_hn (added inside r*(.))

    # ---- init loop state (VMEM scratch; persists across the pl.loop bodies) --
    m_ref[...] = jnp.full((B, 1), _NEG, jnp.float32)
    den_ref[...] = jnp.zeros((B, 1), jnp.float32)
    h_ref[...] = jnp.zeros((B, D), jnp.float32)
    num_ref[...] = jnp.zeros((B, D), jnp.float32)

    # ---- prologue (off the serial path): input projection + masked scores ----
    # gi_ref[t] = emb_t @ W_ih + merged bias; p_ref[t] temporarily holds the
    # masked attention score; (m_ref, den_ref) is an online softmax max/denom.
    @pl.loop(0, t_hi)
    def _(t):
        x_t = emb_ref[t]                                         # (B, D)
        gi_ref[t] = (jnp.dot(x_t, wih, preferred_element_type=jnp.float32)
                     + bgi)
        a_t = jnp.sum(x_t * feat, axis=-1, keepdims=True)        # (B, 1)
        a_t = jnp.where(t < lens, a_t, _NEG)
        m_old = m_ref[...]
        m_new = jnp.maximum(m_old, a_t)
        den_ref[...] = (den_ref[...] * jnp.exp(m_old - m_new)
                        + jnp.exp(a_t - m_new))
        m_ref[...] = m_new
        p_ref[t] = a_t

    # Normalize to softmax weights in one vectorized pass (exact divide).
    # Rows with lens == 0 get weight 0 (documented deviation from the
    # reference's NaN).  Entries t >= t_hi are never read by the recurrence.
    inv_den = jnp.where(lens > 0, 1.0 / den_ref[...], 0.0)
    p_ref[...] = jnp.exp(p_ref[...] - m_ref[...]) * inv_den

    # ---- serial GRU recurrence: only h-dependent work remains ----------------
    @pl.loop(0, t_hi)
    def _(t):
        h = h_ref[...]
        gi = gi_ref[t]                                           # (B, 3D)
        gh = jnp.dot(h, whh, preferred_element_type=jnp.float32)
        r = jax.nn.sigmoid(gi[:, 0:D] + gh[:, 0:D])
        z = jax.nn.sigmoid(gi[:, D:2 * D] + gh[:, D:2 * D])
        n = jnp.tanh(gi[:, 2 * D:] + r * (gh[:, 2 * D:] + bhn))
        h_new = (1.0 - z) * n + z * h                            # (B, D)
        num_ref[...] += p_ref[t] * h_new                         # attn-weighted sum
        # packed-sequence semantics: hidden only advances while t < len[b]
        h_ref[...] = jnp.where(t < lens, h_new, h)

    # ---- sr = w * feat + (1 - w) * [h_sum, h_t] @ W_B (split, no concat) ------
    wb = wb_ref[...]                                             # (2D, D)
    proj = (jnp.dot(num_ref[...], wb[0:D, :], preferred_element_type=jnp.float32)
            + jnp.dot(h_ref[...], wb[D:2 * D, :],
                      preferred_element_type=jnp.float32))
    w = w_ref[0, 0]
    out_ref[...] = w * feat + (1.0 - w) * proj


# ----------------------------------------------------------------------------
# Wrapper
# ----------------------------------------------------------------------------
def _round_up(x, m):
    return ((x + m - 1) // m) * m


def _physical_vmem_bytes():
    try:
        return int(pltpu.get_tpu_info().vmem_capacity_bytes)
    except Exception:
        return 64 * 1024 * 1024       # conservative: fits every generation


def _num_parallel_cores():
    """2 on chips whose grid 'parallel' axis shards across TensorCores."""
    try:
        kind = jax.devices()[0].device_kind.lower()
    except Exception:
        return 1
    return 2 if any(tag in kind for tag in ("v4", "v5p", "v7")) else 1


def _choose_tiling(Bp, T, Dp):
    """Pick the batch tile bt (mult of 8 dividing Bp) and the scoped VMEM limit."""
    phys = _physical_vmem_bytes()
    vmem_limit = min((phys * 3) // 4, 100 * 1024 * 1024)
    # resident weights/biases, double-buffered by the default pipeline
    weight_bytes = 2 * 4 * (8 * Dp * Dp + 32 * Dp + 64)
    budget = max(vmem_limit - weight_bytes - 4 * 1024 * 1024, 2 * 1024 * 1024)
    # bytes per batch row: emb(x2) + gi + p(lane-padded) + feat/out(x2) + state
    per_row = 4 * (5 * T * Dp + 128 * T + 6 * Dp + 512)
    bt = max(8, min(Bp, (budget // per_row) // 8 * 8))
    if _num_parallel_cores() >= 2 and Bp >= 16:
        bt = min(bt, max(8, (Bp // 2) // 8 * 8))   # >=2 tiles: feed both cores
    while bt > 8 and Bp % bt != 0:
        bt -= 8
    return max(bt, 8), int(vmem_limit)


def _prepare_params(params, D, Dp):
    """Merge GRU biases (r/z hidden bias folded into the input-side bias) and
    zero-pad all weights per-gate so the kernel sees lane width Dp."""
    Wih, Whh, bih, bhh, WB = [jnp.asarray(p, jnp.float32) for p in params]
    # gate order [r | z | n]; the n-gate hidden bias must stay inside r*(.)
    bias_gi = bih + jnp.concatenate(
        [bhh[:, :2 * D], jnp.zeros((1, D), jnp.float32)], axis=1)  # (1, 3D)
    bhh_n = bhh[:, 2 * D:]                                         # (1, D)
    pad = Dp - D

    def pad_gate_mat(Wt):                  # (D, 3D) -> (Dp, 3Dp)
        W3 = Wt.reshape(D, 3, D)
        W3 = jnp.pad(W3, ((0, pad), (0, 0), (0, pad)))
        return W3.reshape(Dp, 3 * Dp)

    def pad_gate_bias(b):                  # (1, 3D) -> (1, 3Dp)
        b3 = b.reshape(1, 3, D)
        b3 = jnp.pad(b3, ((0, 0), (0, 0), (0, pad)))
        return b3.reshape(1, 3 * Dp)

    def pad_linear(Wt):                    # (2D, D) -> (2Dp, Dp), per-half rows
        W2 = Wt.reshape(2, D, D)
        W2 = jnp.pad(W2, ((0, 0), (0, pad), (0, pad)))
        return W2.reshape(2 * Dp, Dp)

    return (pad_gate_mat(Wih), pad_gate_mat(Whh), pad_gate_bias(bias_gi),
            jnp.pad(bhh_n, ((0, 0), (0, pad))), pad_linear(WB))


def ssrm_forward(emb_seqs, lens, feat_u, params, w=0.5):
    B, T, D = emb_seqs.shape
    Dp = _round_up(D, 128)                 # lane-dense features
    Bp = _round_up(B, 8)                   # sublane-dense batch
    bt, vmem_limit = _choose_tiling(Bp, T, Dp)
    ntiles = Bp // bt

    emb_p = jnp.pad(emb_seqs.astype(jnp.float32),
                    ((0, Bp - B), (0, 0), (0, Dp - D)))
    emb_tm = jnp.transpose(emb_p, (1, 0, 2))                 # (T, Bp, Dp) time-major
    feat_p = jnp.pad(feat_u.astype(jnp.float32), ((0, Bp - B), (0, Dp - D)))
    lens_flat = jnp.pad(lens.astype(jnp.int32), (0, Bp - B))
    lens_p = lens_flat.reshape(Bp, 1)
    # per-tile max length (scalar-prefetch) bounds every in-kernel loop
    tmax_tiles = jnp.minimum(jnp.max(lens_flat.reshape(ntiles, bt), axis=1),
                             T).astype(jnp.int32)
    wih, whh, bgi, bhn, wb = _prepare_params(params, D, Dp)
    w_arr = jnp.full((1, 1), w, jnp.float32)

    grid_spec = pltpu.PrefetchScalarGridSpec(
        num_scalar_prefetch=1,
        grid=(ntiles,),
        in_specs=[
            pl.BlockSpec(memory_space=pltpu.MemorySpace.SMEM),      # w (1,1)
            pl.BlockSpec((bt, 1), lambda i, tm: (i, 0)),            # lens
            pl.BlockSpec((T, bt, Dp), lambda i, tm: (0, i, 0)),     # emb time-major
            pl.BlockSpec((bt, Dp), lambda i, tm: (i, 0)),           # feat_u
            pl.BlockSpec((Dp, 3 * Dp), lambda i, tm: (0, 0)),       # W_ih^T
            pl.BlockSpec((Dp, 3 * Dp), lambda i, tm: (0, 0)),       # W_hh^T
            pl.BlockSpec((1, 3 * Dp), lambda i, tm: (0, 0)),        # b_ih + b_hh[rz]
            pl.BlockSpec((1, Dp), lambda i, tm: (0, 0)),            # b_hh[n]
            pl.BlockSpec((2 * Dp, Dp), lambda i, tm: (0, 0)),       # W_B^T
        ],
        out_specs=pl.BlockSpec((bt, Dp), lambda i, tm: (i, 0)),
        scratch_shapes=[
            pltpu.VMEM((T, bt, 3 * Dp), jnp.float32),   # hoisted gi
            pltpu.VMEM((T, bt, 1), jnp.float32),        # softmax weights p_t
            pltpu.VMEM((bt, Dp), jnp.float32),          # h
            pltpu.VMEM((bt, Dp), jnp.float32),          # attn numerator
            pltpu.VMEM((bt, 1), jnp.float32),           # online max
            pltpu.VMEM((bt, 1), jnp.float32),           # online denom
        ],
    )

    out = pl.pallas_call(
        ssrm_kernel,
        out_shape=jax.ShapeDtypeStruct((Bp, Dp), jnp.float32),
        grid_spec=grid_spec,
        compiler_params=pltpu.CompilerParams(
            dimension_semantics=("parallel",),          # batch tiles independent
            vmem_limit_bytes=vmem_limit,
        ),
    )(tmax_tiles, w_arr, lens_p, emb_tm, feat_p, wih, whh, bgi, bhn, wb)

    return out[:B, :D]


# ----------------------------------------------------------------------------
# Parameters + pure-JAX reference (for correctness check)
# ----------------------------------------------------------------------------
def init_params(key, D):
    """Deterministic synthetic parameters (shapes match nn.GRU + nn.Linear)."""
    k = 1.0 / jnp.sqrt(jnp.float32(D))
    ks = jax.random.split(key, 5)
    Wih = jax.random.uniform(ks[0], (D, 3 * D), jnp.float32, -k, k)
    Whh = jax.random.uniform(ks[1], (D, 3 * D), jnp.float32, -k, k)
    bih = jax.random.uniform(ks[2], (1, 3 * D), jnp.float32, -k, k)
    bhh = jax.random.uniform(ks[3], (1, 3 * D), jnp.float32, -k, k)
    kB = 1.0 / jnp.sqrt(jnp.float32(2 * D))
    WB = jax.random.uniform(ks[4], (2 * D, D), jnp.float32, -kB, kB)
    return Wih, Whh, bih, bhh, WB


def ssrm_reference(emb_seqs, lens, feat_u, params, w=0.5):
    Wih, Whh, bih, bhh, WB = params
    B, T, D = emb_seqs.shape

    def step(h, xt_t):
        x_t, t = xt_t
        gi = x_t @ Wih + bih
        gh = h @ Whh + bhh
        r = jax.nn.sigmoid(gi[:, :D] + gh[:, :D])
        z = jax.nn.sigmoid(gi[:, D:2 * D] + gh[:, D:2 * D])
        n = jnp.tanh(gi[:, 2 * D:] + r * gh[:, 2 * D:])
        h_new = (1 - z) * n + z * h
        valid = (t < lens)[:, None].astype(jnp.float32)
        return valid * h_new + (1 - valid) * h, h_new

    h_t, outs = lax.scan(step, jnp.zeros((B, D), jnp.float32),
                         (jnp.swapaxes(emb_seqs, 0, 1), jnp.arange(T)))
    outs = jnp.swapaxes(outs, 0, 1)                                  # (B, T, D)
    alpha = jnp.sum(emb_seqs * feat_u[:, None, :], axis=-1)
    mask = jnp.arange(T)[None, :] >= lens[:, None]
    alpha = jnp.where(mask, -jnp.inf, alpha)
    p = jax.nn.softmax(alpha, axis=1)
    h_sum = jnp.sum(p[:, :, None] * outs, axis=1)
    ct = jnp.concatenate([h_sum, h_t], axis=1)
    return w * feat_u + (1 - w) * (ct @ WB)


if __name__ == "__main__":
    B, T, D = 2, 8, 32
    key = jax.random.PRNGKey(0)
    k_emb, k_feat, k_par = jax.random.split(key, 3)

    emb_seqs = jax.random.normal(k_emb, (B, T, D), jnp.float32)
    feat_u = jax.random.normal(k_feat, (B, D), jnp.float32)
    lens = jnp.array([8, 5], dtype=jnp.int32)   # descending, as pack_padded expects
    params = init_params(k_par, D)

    sr = ssrm_forward(emb_seqs, lens, feat_u, params, w=0.5)
    sr = jax.block_until_ready(sr)

    sr_ref = ssrm_reference(emb_seqs, lens, feat_u, params, w=0.5)
    assert sr.shape == (B, D)
    assert bool(jnp.all(jnp.isfinite(sr)))
    max_err = float(jnp.max(jnp.abs(sr - sr_ref)))
    assert jnp.allclose(sr, sr_ref, atol=5e-3, rtol=5e-3), max_err

    print("KERNEL_OK")
</pallas_src>

<mosaic_0001>
module attributes {stable_mosaic.version = 11 : i64} {
  func.func @ssrm_kernel(%arg0: i32, %arg1: memref<1xi32, #tpu.memory_space<smem>>, %arg2: memref<1x1xf32, #tpu.memory_space<smem>>, %arg3: memref<8x1xi32, #tpu.memory_space<vmem>>, %arg4: memref<8x8x128xf32, #tpu.memory_space<vmem>>, %arg5: memref<8x128xf32, #tpu.memory_space<vmem>>, %arg6: memref<128x384xf32, #tpu.memory_space<vmem>>, %arg7: memref<128x384xf32, #tpu.memory_space<vmem>>, %arg8: memref<1x384xf32, #tpu.memory_space<vmem>>, %arg9: memref<1x128xf32, #tpu.memory_space<vmem>>, %arg10: memref<256x128xf32, #tpu.memory_space<vmem>>, %arg11: memref<8x128xf32, #tpu.memory_space<vmem>>, %arg12: memref<8x8x384xf32, #tpu.memory_space<vmem>>, %arg13: memref<8x8x1xf32, #tpu.memory_space<vmem>>, %arg14: memref<8x128xf32, #tpu.memory_space<vmem>>, %arg15: memref<8x128xf32, #tpu.memory_space<vmem>>, %arg16: memref<8x1xf32, #tpu.memory_space<vmem>>, %arg17: memref<8x1xf32, #tpu.memory_space<vmem>>) attributes {dimension_semantics = [#tpu.dimension_semantics<parallel>], iteration_bounds = array<i64: 1>, scalar_prefetch = 1 : i64, scratch_operands = 6 : i64, tpu.core_type = #tpu.core_type<tc>, window_params = [{transform_indices = @transform_0, window_bounds = array<i64: 1, 1>}, {transform_indices = @transform_1, window_bounds = array<i64: 8, 1>}, {transform_indices = @transform_2, window_bounds = array<i64: 8, 8, 128>}, {transform_indices = @transform_3, window_bounds = array<i64: 8, 128>}, {pipeline_mode = #tpu.pipeline_mode<synchronous>, transform_indices = @transform_4, window_bounds = array<i64: 128, 384>}, {pipeline_mode = #tpu.pipeline_mode<synchronous>, transform_indices = @transform_5, window_bounds = array<i64: 128, 384>}, {pipeline_mode = #tpu.pipeline_mode<synchronous>, transform_indices = @transform_6, window_bounds = array<i64: 1, 384>}, {pipeline_mode = #tpu.pipeline_mode<synchronous>, transform_indices = @transform_7, window_bounds = array<i64: 1, 128>}, {pipeline_mode = #tpu.pipeline_mode<synchronous>, transform_indices = @transform_8, window_bounds = array<i64: 256, 128>}, {transform_indices = @transform_9, window_bounds = array<i64: 8, 128>}]} {
    %0 = arith.index_cast %arg0 : i32 to index
    %1 = memref.load %arg1[%0] : memref<1xi32, #tpu.memory_space<smem>>
    %c0 = arith.constant 0 : index
    %c0_0 = arith.constant 0 : index
    %2 = vector.load %arg5[%c0, %c0_0] : memref<8x128xf32, #tpu.memory_space<vmem>>, vector<8x128xf32>
    %c0_1 = arith.constant 0 : index
    %c0_2 = arith.constant 0 : index
    %3 = vector.load %arg3[%c0_1, %c0_2] : memref<8x1xi32, #tpu.memory_space<vmem>>, vector<8x1xi32>
    %c0_3 = arith.constant 0 : index
    %c0_4 = arith.constant 0 : index
    %4 = vector.load %arg6[%c0_3, %c0_4] : memref<128x384xf32, #tpu.memory_space<vmem>>, vector<128x384xf32>
    %c0_5 = arith.constant 0 : index
    %c0_6 = arith.constant 0 : index
    %5 = vector.load %arg7[%c0_5, %c0_6] : memref<128x384xf32, #tpu.memory_space<vmem>>, vector<128x384xf32>
    %c0_7 = arith.constant 0 : index
    %c0_8 = arith.constant 0 : index
    %6 = vector.load %arg8[%c0_7, %c0_8] : memref<1x384xf32, #tpu.memory_space<vmem>>, vector<1x384xf32>
    %c0_9 = arith.constant 0 : index
    %c0_10 = arith.constant 0 : index
    %7 = vector.load %arg9[%c0_9, %c0_10] : memref<1x128xf32, #tpu.memory_space<vmem>>, vector<1x128xf32>
    %cst = arith.constant -1.000000e+30 : f32
    %8 = vector.broadcast %cst : f32 to vector<8x1xf32>
    %c0_11 = arith.constant 0 : index
    %c0_12 = arith.constant 0 : index
    %9 = vector.load %arg16[%c0_11, %c0_12] : memref<8x1xf32, #tpu.memory_space<vmem>>, vector<8x1xf32>
    tpu.vector_store %arg16[%c0_11, %c0_12], %8 {strides = array<i32>} : memref<8x1xf32, #tpu.memory_space<vmem>>, vector<8x1xf32>,
    %cst_13 = arith.constant 0.000000e+00 : f32
    %10 = vector.broadcast %cst_13 : f32 to vector<8x1xf32>
    %c0_14 = arith.constant 0 : index
    %c0_15 = arith.constant 0 : index
    %11 = vector.load %arg17[%c0_14, %c0_15] : memref<8x1xf32, #tpu.memory_space<vmem>>, vector<8x1xf32>
    tpu.vector_store %arg17[%c0_14, %c0_15], %10 {strides = array<i32>} : memref<8x1xf32, #tpu.memory_space<vmem>>, vector<8x1xf32>,
    %cst_16 = arith.constant 0.000000e+00 : f32
    %12 = vector.broadcast %cst_16 : f32 to vector<8x128xf32>
    %c0_17 = arith.constant 0 : index
    %c0_18 = arith.constant 0 : index
    %13 = vector.load %arg14[%c0_17, %c0_18] : memref<8x128xf32, #tpu.memory_space<vmem>>, vector<8x128xf32>
    tpu.vector_store %arg14[%c0_17, %c0_18], %12 {strides = array<i32>} : memref<8x128xf32, #tpu.memory_space<vmem>>, vector<8x128xf32>,
    %cst_19 = arith.constant 0.000000e+00 : f32
    %14 = vector.broadcast %cst_19 : f32 to vector<8x128xf32>
    %c0_20 = arith.constant 0 : index
    %c0_21 = arith.constant 0 : index
    %15 = vector.load %arg15[%c0_20, %c0_21] : memref<8x128xf32, #tpu.memory_space<vmem>>, vector<8x128xf32>
    tpu.vector_store %arg15[%c0_20, %c0_21], %14 {strides = array<i32>} : memref<8x128xf32, #tpu.memory_space<vmem>>, vector<8x128xf32>,
    %c0_i32 = arith.constant 0 : i32
    %16 = arith.subi %1, %c0_i32 : i32
    %c1_i32 = arith.constant 1 : i32
    %c1_i32_22 = arith.constant 1 : i32
    %17 = arith.subi %c1_i32, %c1_i32_22 : i32
    %18 = arith.addi %16, %17 : i32
    %c1_i32_23 = arith.constant 1 : i32
    %19 = arith.divsi %18, %c1_i32_23 : i32
    %c1_i32_24 = arith.constant 1 : i32
    %c0_i32_25 = arith.constant 0 : i32
    %c0_i32_26 = arith.constant 0 : i32
    %20 = arith.subi %19, %c0_i32_26 : i32
    %21 = arith.addi %c0_i32_26, %20 : i32
    %c1_i32_27 = arith.constant 1 : i32
    scf.for %arg18 = %c0_i32_26 to %21 step %c1_i32_27  : i32 {
      %61 = arith.muli %arg18, %c1_i32_24 : i32
      %62 = arith.addi %c0_i32_25, %61 : i32
      %63 = arith.index_cast %62 : i32 to index
      %c0_62 = arith.constant 0 : index
      %c0_63 = arith.constant 0 : index
      %64 = vector.load %arg4[%63, %c0_62, %c0_63] : memref<8x8x128xf32, #tpu.memory_space<vmem>>, vector<1x8x128xf32>
      %65 = vector.shape_cast %64 : vector<1x8x128xf32> to vector<8x128xf32>
      %cst_64 = arith.constant dense<0.000000e+00> : vector<8x384xf32>
      %66 = tpu.matmul %65, %4, %cst_64 {dimension_numbers = #tpu.dot_dimension_numbers<[1], [0], [0], [1], [0, 0, 1, 1], [], []>} : vector<8x128xf32>, vector<128x384xf32>, vector<8x384xf32> -> vector<8x384xf32>
      %67 = vector.broadcast %6 : vector<1x384xf32> to vector<8x384xf32>
      %68 = arith.addf %66, %67 : vector<8x384xf32>
      %69 = arith.index_cast %62 : i32 to index
      %c0_65 = arith.constant 0 : index
      %c0_66 = arith.constant 0 : index
      %70 = vector.load %arg12[%69, %c0_65, %c0_66] : memref<8x8x384xf32, #tpu.memory_space<vmem>>, vector<1x8x384xf32>
      %71 = vector.shape_cast %70 : vector<1x8x384xf32> to vector<8x384xf32>
      %72 = vector.shape_cast %68 : vector<8x384xf32> to vector<1x8x384xf32>
      tpu.vector_store %arg12[%69, %c0_65, %c0_66], %72 {strides = array<i32>} : memref<8x8x384xf32, #tpu.memory_space<vmem>>, vector<1x8x384xf32>,
      %73 = arith.mulf %65, %2 : vector<8x128xf32>
      %cst_67 = arith.constant dense<0.000000e+00> : vector<8xf32>
      %74 = vector.multi_reduction <add>, %73, %cst_67 [1] : vector<8x128xf32> to vector<8xf32>
      %75 = vector.shape_cast %74 : vector<8xf32> to vector<8x1xf32>
      %76 = vector.broadcast %62 : i32 to vector<8x1xi32>
      %77 = arith.cmpi slt, %76, %3 : vector<8x1xi32>
      %cst_68 = arith.constant -1.000000e+30 : f32
      %78 = vector.broadcast %cst_68 : f32 to vector<8x1xf32>
      %79 = arith.select %77, %75, %78 : vector<8x1xi1>, vector<8x1xf32>
      %c0_69 = arith.constant 0 : index
      %c0_70 = arith.constant 0 : index
      %80 = vector.load %arg16[%c0_69, %c0_70] : memref<8x1xf32, #tpu.memory_space<vmem>>, vector<8x1xf32>
      %81 = arith.maximumf %80, %79 : vector<8x1xf32>
      %c0_71 = arith.constant 0 : index
      %c0_72 = arith.constant 0 : index
      %82 = vector.load %arg17[%c0_71, %c0_72] : memref<8x1xf32, #tpu.memory_space<vmem>>, vector<8x1xf32>
      %83 = arith.subf %80, %81 : vector<8x1xf32>
      %84 = math.exp %83 : vector<8x1xf32>
      %85 = arith.mulf %82, %84 : vector<8x1xf32>
      %86 = arith.subf %79, %81 : vector<8x1xf32>
      %87 = math.exp %86 : vector<8x1xf32>
      %88 = arith.addf %85, %87 : vector<8x1xf32>
      %c0_73 = arith.constant 0 : index
      %c0_74 = arith.constant 0 : index
      %89 = vector.load %arg17[%c0_73, %c0_74] : memref<8x1xf32, #tpu.memory_space<vmem>>, vector<8x1xf32>
      tpu.vector_store %arg17[%c0_73, %c0_74], %88 {strides = array<i32>} : memref<8x1xf32, #tpu.memory_space<vmem>>, vector<8x1xf32>,
      %c0_75 = arith.constant 0 : index
      %c0_76 = arith.constant 0 : index
      %90 = vector.load %arg16[%c0_75, %c0_76] : memref<8x1xf32, #tpu.memory_space<vmem>>, vector<8x1xf32>
      tpu.vector_store %arg16[%c0_75, %c0_76], %81 {strides = array<i32>} : memref<8x1xf32, #tpu.memory_space<vmem>>, vector<8x1xf32>,
      %91 = arith.index_cast %62 : i32 to index
      %c0_77 = arith.constant 0 : index
      %c0_78 = arith.constant 0 : index
      %92 = vector.load %arg13[%91, %c0_77, %c0_78] : memref<8x8x1xf32, #tpu.memory_space<vmem>>, vector<1x8x1xf32>
      %93 = vector.shape_cast %92 : vector<1x8x1xf32> to vector<8x1xf32>
      %94 = vector.shape_cast %79 : vector<8x1xf32> to vector<1x8x1xf32>
      tpu.vector_store %arg13[%91, %c0_77, %c0_78], %94 {strides = array<i32>} : memref<8x8x1xf32, #tpu.memory_space<vmem>>, vector<1x8x1xf32>,
    }
    %c0_i32_28 = arith.constant 0 : i32
    %22 = vector.broadcast %c0_i32_28 : i32 to vector<8x1xi32>
    %23 = arith.cmpi sgt, %3, %22 : vector<8x1xi32>
    %c0_29 = arith.constant 0 : index
    %c0_30 = arith.constant 0 : index
    %24 = vector.load %arg17[%c0_29, %c0_30] : memref<8x1xf32, #tpu.memory_space<vmem>>, vector<8x1xf32>
    %cst_31 = arith.constant 1.000000e+00 : f32
    %25 = vector.broadcast %cst_31 : f32 to vector<8x1xf32>
    %26 = arith.divf %25, %24 : vector<8x1xf32>
    %cst_32 = arith.constant 0.000000e+00 : f32
    %27 = vector.broadcast %cst_32 : f32 to vector<8x1xf32>
    %28 = arith.select %23, %26, %27 : vector<8x1xi1>, vector<8x1xf32>
    %c0_33 = arith.constant 0 : index
    %c0_34 = arith.constant 0 : index
    %c0_35 = arith.constant 0 : index
    %29 = vector.load %arg13[%c0_33, %c0_34, %c0_35] : memref<8x8x1xf32, #tpu.memory_space<vmem>>, vector<8x8x1xf32>
    %c0_36 = arith.constant 0 : index
    %c0_37 = arith.constant 0 : index
    %30 = vector.load %arg16[%c0_36, %c0_37] : memref<8x1xf32, #tpu.memory_space<vmem>>, vector<8x1xf32>
    %31 = vector.shape_cast %30 : vector<8x1xf32> to vector<1x8x1xf32>
    %32 = vector.broadcast %31 : vector<1x8x1xf32> to vector<8x8x1xf32>
    %33 = arith.subf %29, %32 : vector<8x8x1xf32>
    %34 = math.exp %33 : vector<8x8x1xf32>
    %35 = vector.shape_cast %28 : vector<8x1xf32> to vector<1x8x1xf32>
    %36 = vector.broadcast %35 : vector<1x8x1xf32> to vector<8x8x1xf32>
    %37 = arith.mulf %34, %36 : vector<8x8x1xf32>
    %c0_38 = arith.constant 0 : index
    %c0_39 = arith.constant 0 : index
    %c0_40 = arith.constant 0 : index
    %38 = vector.load %arg13[%c0_38, %c0_39, %c0_40] : memref<8x8x1xf32, #tpu.memory_space<vmem>>, vector<8x8x1xf32>
    tpu.vector_store %arg13[%c0_38, %c0_39, %c0_40], %37 {strides = array<i32>} : memref<8x8x1xf32, #tpu.memory_space<vmem>>, vector<8x8x1xf32>,
    %c0_i32_41 = arith.constant 0 : i32
    %39 = arith.subi %1, %c0_i32_41 : i32
    %c1_i32_42 = arith.constant 1 : i32
    %c1_i32_43 = arith.constant 1 : i32
    %40 = arith.subi %c1_i32_42, %c1_i32_43 : i32
    %41 = arith.addi %39, %40 : i32
    %c1_i32_44 = arith.constant 1 : i32
    %42 = arith.divsi %41, %c1_i32_44 : i32
    %c1_i32_45 = arith.constant 1 : i32
    %c0_i32_46 = arith.constant 0 : i32
    %c0_i32_47 = arith.constant 0 : i32
    %43 = arith.subi %42, %c0_i32_47 : i32
    %44 = arith.addi %c0_i32_47, %43 : i32
    %c1_i32_48 = arith.constant 1 : i32
    scf.for %arg18 = %c0_i32_47 to %44 step %c1_i32_48  : i32 {
      %61 = arith.muli %arg18, %c1_i32_45 : i32
      %62 = arith.addi %c0_i32_46, %61 : i32
      %c0_62 = arith.constant 0 : index
      %c0_63 = arith.constant 0 : index
      %63 = vector.load %arg14[%c0_62, %c0_63] : memref<8x128xf32, #tpu.memory_space<vmem>>, vector<8x128xf32>
      %64 = arith.index_cast %62 : i32 to index
      %c0_64 = arith.constant 0 : index
      %c0_65 = arith.constant 0 : index
      %65 = vector.load %arg12[%64, %c0_64, %c0_65] : memref<8x8x384xf32, #tpu.memory_space<vmem>>, vector<1x8x384xf32>
      %66 = vector.shape_cast %65 : vector<1x8x384xf32> to vector<8x384xf32>
      %cst_66 = arith.constant dense<0.000000e+00> : vector<8x384xf32>
      %67 = tpu.matmul %63, %5, %cst_66 {dimension_numbers = #tpu.dot_dimension_numbers<[1], [0], [0], [1], [0, 0, 1, 1], [], []>} : vector<8x128xf32>, vector<128x384xf32>, vector<8x384xf32> -> vector<8x384xf32>
      %68 = vector.extract_strided_slice %66 {offsets = [0, 0], sizes = [8, 128], strides = [1, 1]} : vector<8x384xf32> to vector<8x128xf32>
      %69 = vector.extract_strided_slice %67 {offsets = [0, 0], sizes = [8, 128], strides = [1, 1]} : vector<8x384xf32> to vector<8x128xf32>
      %70 = arith.addf %68, %69 : vector<8x128xf32>
      %71 = arith.negf %70 : vector<8x128xf32>
      %72 = math.exp %71 : vector<8x128xf32>
      %cst_67 = arith.constant 1.000000e+00 : f32
      %73 = vector.broadcast %cst_67 : f32 to vector<8x128xf32>
      %74 = arith.addf %73, %72 : vector<8x128xf32>
      %75 = arith.divf %73, %74 : vector<8x128xf32>
      %76 = vector.extract_strided_slice %66 {offsets = [0, 128], sizes = [8, 128], strides = [1, 1]} : vector<8x384xf32> to vector<8x128xf32>
      %77 = vector.extract_strided_slice %67 {offsets = [0, 128], sizes = [8, 128], strides = [1, 1]} : vector<8x384xf32> to vector<8x128xf32>
      %78 = arith.addf %76, %77 : vector<8x128xf32>
      %79 = arith.negf %78 : vector<8x128xf32>
      %80 = math.exp %79 : vector<8x128xf32>
      %cst_68 = arith.constant 1.000000e+00 : f32
      %81 = vector.broadcast %cst_68 : f32 to vector<8x128xf32>
      %82 = arith.addf %81, %80 : vector<8x128xf32>
      %83 = arith.divf %81, %82 : vector<8x128xf32>
      %84 = vector.extract_strided_slice %66 {offsets = [0, 256], sizes = [8, 128], strides = [1, 1]} : vector<8x384xf32> to vector<8x128xf32>
      %85 = vector.extract_strided_slice %67 {offsets = [0, 256], sizes = [8, 128], strides = [1, 1]} : vector<8x384xf32> to vector<8x128xf32>
      %86 = vector.broadcast %7 : vector<1x128xf32> to vector<8x128xf32>
      %87 = arith.addf %85, %86 : vector<8x128xf32>
      %88 = arith.mulf %75, %87 : vector<8x128xf32>
      %89 = arith.addf %84, %88 : vector<8x128xf32>
      %90 = math.tanh %89 : vector<8x128xf32>
      %cst_69 = arith.constant 1.000000e+00 : f32
      %91 = vector.broadcast %cst_69 : f32 to vector<8x128xf32>
      %92 = arith.subf %91, %83 : vector<8x128xf32>
      %93 = arith.mulf %92, %90 : vector<8x128xf32>
      %94 = arith.mulf %83, %63 : vector<8x128xf32>
      %95 = arith.addf %93, %94 : vector<8x128xf32>
      %c0_70 = arith.constant 0 : index
      %c0_71 = arith.constant 0 : index
      %96 = vector.load %arg15[%c0_70, %c0_71] : memref<8x128xf32, #tpu.memory_space<vmem>>, vector<8x128xf32>
      %97 = arith.index_cast %62 : i32 to index
      %c0_72 = arith.constant 0 : index
      %c0_73 = arith.constant 0 : index
      %98 = vector.load %arg13[%97, %c0_72, %c0_73] : memref<8x8x1xf32, #tpu.memory_space<vmem>>, vector<1x8x1xf32>
      %99 = vector.shape_cast %98 : vector<1x8x1xf32> to vector<8x1xf32>
      %100 = vector.broadcast %99 : vector<8x1xf32> to vector<8x128xf32>
      %101 = arith.mulf %100, %95 : vector<8x128xf32>
      %102 = arith.addf %96, %101 : vector<8x128xf32>
      %c0_74 = arith.constant 0 : index
      %c0_75 = arith.constant 0 : index
      %103 = vector.load %arg15[%c0_74, %c0_75] : memref<8x128xf32, #tpu.memory_space<vmem>>, vector<8x128xf32>
      tpu.vector_store %arg15[%c0_74, %c0_75], %102 {strides = array<i32>} : memref<8x128xf32, #tpu.memory_space<vmem>>, vector<8x128xf32>,
      %104 = vector.broadcast %62 : i32 to vector<8x1xi32>
      %105 = arith.cmpi slt, %104, %3 : vector<8x1xi32>
      %106 = vector.shape_cast %105 : vector<8x1xi1> to vector<8x1xi1>
      %107 = vector.broadcast %106 : vector<8x1xi1> to vector<8x128xi1>
      %108 = arith.select %107, %95, %63 : vector<8x128xi1>, vector<8x128xf32>
      %c0_76 = arith.constant 0 : index
      %c0_77 = arith.constant 0 : index
      %109 = vector.load %arg14[%c0_76, %c0_77] : memref<8x128xf32, #tpu.memory_space<vmem>>, vector<8x128xf32>
      tpu.vector_store %arg14[%c0_76, %c0_77], %108 {strides = array<i32>} : memref<8x128xf32, #tpu.memory_space<vmem>>, vector<8x128xf32>,
    }
    %c0_49 = arith.constant 0 : index
    %c0_50 = arith.constant 0 : index
    %45 = vector.load %arg10[%c0_49, %c0_50] : memref<256x128xf32, #tpu.memory_space<vmem>>, vector<256x128xf32>
    %c0_51 = arith.constant 0 : index
    %c0_52 = arith.constant 0 : index
    %46 = vector.load %arg15[%c0_51, %c0_52] : memref<8x128xf32, #tpu.memory_space<vmem>>, vector<8x128xf32>
    %47 = vector.extract_strided_slice %45 {offsets = [0, 0], sizes = [128, 128], strides = [1, 1]} : vector<256x128xf32> to vector<128x128xf32>
    %cst_53 = arith.constant dense<0.000000e+00> : vector<8x128xf32>
    %48 = tpu.matmul %46, %47, %cst_53 {dimension_numbers = #tpu.dot_dimension_numbers<[1], [0], [0], [1], [0, 0, 1, 1], [], []>} : vector<8x128xf32>, vector<128x128xf32>, vector<8x128xf32> -> vector<8x128xf32>
    %c0_54 = arith.constant 0 : index
    %c0_55 = arith.constant 0 : index
    %49 = vector.load %arg14[%c0_54, %c0_55] : memref<8x128xf32, #tpu.memory_space<vmem>>, vector<8x128xf32>
    %50 = vector.extract_strided_slice %45 {offsets = [128, 0], sizes = [128, 128], strides = [1, 1]} : vector<256x128xf32> to vector<128x128xf32>
    %cst_56 = arith.constant dense<0.000000e+00> : vector<8x128xf32>
    %51 = tpu.matmul %49, %50, %cst_56 {dimension_numbers = #tpu.dot_dimension_numbers<[1], [0], [0], [1], [0, 0, 1, 1], [], []>} : vector<8x128xf32>, vector<128x128xf32>, vector<8x128xf32> -> vector<8x128xf32>
    %52 = arith.addf %48, %51 : vector<8x128xf32>
    %c0_57 = arith.constant 0 : index
    %c0_58 = arith.constant 0 : index
    %53 = memref.load %arg2[%c0_57, %c0_58] : memref<1x1xf32, #tpu.memory_space<smem>>
    %54 = vector.broadcast %53 : f32 to vector<8x128xf32>
    %55 = arith.mulf %54, %2 : vector<8x128xf32>
    %cst_59 = arith.constant 1.000000e+00 : f32
    %56 = arith.subf %cst_59, %53 : f32
    %57 = vector.broadcast %56 : f32 to vector<8x128xf32>
    %58 = arith.mulf %57, %52 : vector<8x128xf32>
    %59 = arith.addf %55, %58 : vector<8x128xf32>
    %c0_60 = arith.constant 0 : index
    %c0_61 = arith.constant 0 : index
    %60 = vector.load %arg11[%c0_60, %c0_61] : memref<8x128xf32, #tpu.memory_space<vmem>>, vector<8x128xf32>
    tpu.vector_store %arg11[%c0_60, %c0_61], %59 {strides = array<i32>} : memref<8x128xf32, #tpu.memory_space<vmem>>, vector<8x128xf32>,
    return
  }
  func.func @transform_0(%arg0: i32, %arg1: memref<1xi32, #tpu.memory_space<smem>>) -> (i32, i32) {
    %c0_i32 = arith.constant 0 : i32
    %c0_i32_0 = arith.constant 0 : i32
    %c0_i32_1 = arith.constant 0 : i32
    return %c0_i32, %c0_i32_0 : i32, i32
  }
  func.func @transform_1(%arg0: i32, %arg1: memref<1xi32, #tpu.memory_space<smem>>) -> (i32, i32) {
    %c0_i32 = arith.constant 0 : i32
    %c0_i32_0 = arith.constant 0 : i32
    return %arg0, %c0_i32 : i32, i32
  }
  func.func @transform_2(%arg0: i32, %arg1: memref<1xi32, #tpu.memory_space<smem>>) -> (i32, i32, i32) {
    %c0_i32 = arith.constant 0 : i32
    %c0_i32_0 = arith.constant 0 : i32
    %c0_i32_1 = arith.constant 0 : i32
    return %c0_i32, %arg0, %c0_i32_0 : i32, i32, i32
  }
  func.func @transform_3(%arg0: i32, %arg1: memref<1xi32, #tpu.memory_space<smem>>) -> (i32, i32) {
    %c0_i32 = arith.constant 0 : i32
    %c0_i32_0 = arith.constant 0 : i32
    return %arg0, %c0_i32 : i32, i32
  }
  func.func @transform_4(%arg0: i32, %arg1: memref<1xi32, #tpu.memory_space<smem>>) -> (i32, i32) {
    %c0_i32 = arith.constant 0 : i32
    %c0_i32_0 = arith.constant 0 : i32
    %c0_i32_1 = arith.constant 0 : i32
    return %c0_i32, %c0_i32_0 : i32, i32
  }
  func.func @transform_5(%arg0: i32, %arg1: memref<1xi32, #tpu.memory_space<smem>>) -> (i32, i32) {
    %c0_i32 = arith.constant 0 : i32
    %c0_i32_0 = arith.constant 0 : i32
    %c0_i32_1 = arith.constant 0 : i32
    return %c0_i32, %c0_i32_0 : i32, i32
  }
  func.func @transform_6(%arg0: i32, %arg1: memref<1xi32, #tpu.memory_space<smem>>) -> (i32, i32) {
    %c0_i32 = arith.constant 0 : i32
    %c0_i32_0 = arith.constant 0 : i32
    %c0_i32_1 = arith.constant 0 : i32
    return %c0_i32, %c0_i32_0 : i32, i32
  }
  func.func @transform_7(%arg0: i32, %arg1: memref<1xi32, #tpu.memory_space<smem>>) -> (i32, i32) {
    %c0_i32 = arith.constant 0 : i32
    %c0_i32_0 = arith.constant 0 : i32
    %c0_i32_1 = arith.constant 0 : i32
    return %c0_i32, %c0_i32_0 : i32, i32
  }
  func.func @transform_8(%arg0: i32, %arg1: memref<1xi32, #tpu.memory_space<smem>>) -> (i32, i32) {
    %c0_i32 = arith.constant 0 : i32
    %c0_i32_0 = arith.constant 0 : i32
    %c0_i32_1 = arith.constant 0 : i32
    return %c0_i32, %c0_i32_0 : i32, i32
  }
  func.func @transform_9(%arg0: i32, %arg1: memref<1xi32, #tpu.memory_space<smem>>) -> (i32, i32) {
    %c0_i32 = arith.constant 0 : i32
    %c0_i32_0 = arith.constant 0 : i32
    return %arg0, %c0_i32 : i32, i32
  }
}

</mosaic_0001>

<bundles_post_ra>
// kernel: tpu_custom_call.1
= control target key start
LH: loop header
LB: loop body
LE: loop exit
PB: predicated region body
PF: predicated region fallthrough
CT: control target
= control target key end

     0   :  { %s2000_s0 = inlined_call_operand.<no memory space> [shape: s32[1], index: 0, kind: input, shape index: {}]   ;;  %s2001_s1 = inlined_call_operand.<no memory space> [shape: f32[1,1], index: 1, kind: input, shape index: {}]   ;;  %s2002_s2 = inlined_call_operand.vmem [shape: s32[8,1], index: 2, kind: input, shape index: {}]   ;;  %s2003_s3 = inlined_call_operand.hbm [shape: f32[8,8,128], index: 3, kind: input, shape index: {}]   ;;  %s2004_s4 = inlined_call_operand.vmem [shape: f32[8,128], index: 4, kind: input, shape index: {}]   ;;  %s2005_s5 = inlined_call_operand.hbm [shape: f32[128,384], index: 5, kind: input, shape index: {}]   ;;  %s2006_s6 = inlined_call_operand.hbm [shape: f32[128,384], index: 6, kind: input, shape index: {}]   ;;  %s2007_s7 = inlined_call_operand.vmem [shape: f32[1,384], index: 7, kind: input, shape index: {}]   ;;  %s2008_s8 = inlined_call_operand.vmem [shape: f32[1,128], index: 8, kind: input, shape index: {}]   ;;  %s2009_s9 = inlined_call_operand.hbm [shape: f32[256,128], index: 9, kind: input, shape index: {}]   ;;  %s2010_s10 = inlined_call_operand.hbm [shape: f32[8,128], index: 10, kind: output, shape index: {}]  }
   0x1   :  { %16 = sst [smem:[#allocation10]] %s2001_s1 }
   0x2   :  { %17 = vsyncpa [#allocation12], 0 }
   0x3   :  { %18 = vsyncpa [#allocation15], 0 }
   0x4   :  { %19 = vsyncpa [#allocation18], 0 }
   0x5   :  { %20 = vsyncpa [#allocation13], 0  ;;  %s1449_s15 = smov [#allocation14]   ;;  %s1315_s19 = scalar_lea.hbm %s2005_s5, 6144 }
   0x6   :  { %s44_s16 = sshll.u32 %s1449_s15, 4  ;;  %p1316_p0 = scmp.ne.s32.totalorder %s2005_s5, %s1315_s19  ;;  %s45_s16 = int_to_ptr.vmem [resolvable:$true] %s44_s16 }
   0x7   :  { %p1319_p1 = scmp.lt.u32.totalorder %s1315_s19, %s2005_s5 }
   0x9   :  { %p1321_p2 = pnand %p1319_p1, %p1316_p0 }
   0xb   :  { %1324 = shalt.err (!%p1321_p2)
}
   0xc   :  { %s1325_s1 = scalar_lea.vmem %s45_s16, 6144  ;;  %p1330_p4 = scmp.lt.s32.totalorder %s45_s16, %s45_s16 }
   0xd   :  { %p1326_p3 = scmp.ne.s32.totalorder %s45_s16, %s1325_s1  ;;  %p1331_p5 = scmp.lt.s32.totalorder %s1325_s1, %s1325_s1 }
   0xf   :  { %p1332_p6 = por %p1331_p5, %p1330_p4 }
  0x11   :  { %p1333_p7 = pnand %p1332_p6, %p1326_p3 }
  0x13   :  { %1336 = shalt.err (!%p1333_p7)
}
  0x14   :  { %s1450_s24 = smov 384   ;;  %s1451_s25 = smov 24  }
  0x15   :  { %50 = dma.hbm_to_vmem [thread:$0]  %s2005_s5, 6144, %s45_s16, [#allocation15], %s1450_s24, %s1450_s24, %s1451_s25  }
  0x16   :  { %s1452_s28 = smov [#allocation11]   ;;  %s1337_s12 = scalar_lea.hbm %s2003_s3, 1024 }
  0x17   :  { %s30_s29 = sshll.u32 %s1452_s28, 4  ;;  %p1338_p8 = scmp.ne.s32.totalorder %s2003_s3, %s1337_s12  ;;  %s31_s29 = int_to_ptr.vmem [resolvable:$true] %s30_s29 }
  0x18   :  { %p1341_p9 = scmp.lt.u32.totalorder %s1337_s12, %s2003_s3 }
  0x1a   :  { %p1343_p10 = pnand %p1341_p9, %p1338_p8 }
  0x1c   :  { %1346 = shalt.err (!%p1343_p10)
}
  0x1d   :  { %s1347_s18 = scalar_lea.vmem %s31_s29, 1024  ;;  %p1352_p12 = scmp.lt.s32.totalorder %s31_s29, %s31_s29 }
  0x1e   :  { %p1348_p11 = scmp.ne.s32.totalorder %s31_s29, %s1347_s18  ;;  %p1353_p13 = scmp.lt.s32.totalorder %s1347_s18, %s1347_s18 }
  0x20   :  { %p1354_p0 = por %p1353_p13, %p1352_p12 }
  0x22   :  { %p1355_p1 = pnand %p1354_p0, %p1348_p11 }
  0x24   :  { %1358 = shalt.err (!%p1355_p1)
}
  0x25   :  { %s1453_s5 = smov 128   ;;  %s1454_s16 = smov 8  }
  0x26   :  { %36 = dma.hbm_to_vmem [thread:$0]  %s2003_s3, 1024, %s31_s29, [#allocation12], %s1453_s5, %s1453_s5, %s1454_s16  }
  0x27   :  { %s1455_s21 = smov [#allocation16]   ;;  %s1456_s23 = smov [#allocation17]  }
  0x28   :  { %s56_s22 = sshll.u32 %s1455_s21, 4  ;;  %s72_s1 = sshll.u32 %s1456_s23, 4  ;;  %s57_s22 = int_to_ptr.vmem [resolvable:$true] %s56_s22  ;;  %s1557_s1 = int_to_ptr.vmem [resolvable:$true] %s72_s1 }
  0x29   :  { %s1359_s28 = scalar_lea.hbm %s2006_s6, 6144 }
  0x2a   :  { %p1360_p2 = scmp.ne.s32.totalorder %s2006_s6, %s1359_s28  ;;  %p1363_p3 = scmp.lt.u32.totalorder %s1359_s28, %s2006_s6 }
  0x2c   :  { %p1365_p4 = pnand %p1363_p3, %p1360_p2 }
  0x2e   :  { %1368 = shalt.err (!%p1365_p4)
}
  0x2f   :  { %s1369_s3 = scalar_lea.vmem %s57_s22, 6144  ;;  %p1374_p6 = scmp.lt.s32.totalorder %s57_s22, %s57_s22 }
  0x30   :  { %p1370_p5 = scmp.ne.s32.totalorder %s57_s22, %s1369_s3  ;;  %p1375_p7 = scmp.lt.s32.totalorder %s1369_s3, %s1369_s3 }
  0x32   :  { %p1376_p8 = por %p1375_p7, %p1374_p6 }
  0x34   :  { %p1377_p9 = pnand %p1376_p8, %p1370_p5 }
  0x36   :  { %1380 = shalt.err (!%p1377_p9)
}
  0x37   :  { %62 = dma.hbm_to_vmem [thread:$0]  %s2006_s6, 6144, %s57_s22, [#allocation15], %s1450_s24, %s1450_s24, %s1451_s25  }
  0x38   :  { %s1381_s18 = scalar_lea.hbm %s2009_s9, 4096 }
  0x39   :  { %p1382_p10 = scmp.ne.s32.totalorder %s2009_s9, %s1381_s18  ;;  %p1385_p11 = scmp.lt.u32.totalorder %s1381_s18, %s2009_s9 }
  0x3b   :  { %p1387_p12 = pnand %p1385_p11, %p1382_p10 }
  0x3d   :  { %1390 = shalt.err (!%p1387_p12)
}
  0x3e   :  { %s1391_s26 = scalar_lea.vmem %s1557_s1, 4096  ;;  %p1396_p0 = scmp.lt.s32.totalorder %s1557_s1, %s1557_s1 }
  0x3f   :  { %p1392_p13 = scmp.ne.s32.totalorder %s1557_s1, %s1391_s26  ;;  %p1397_p1 = scmp.lt.s32.totalorder %s1391_s26, %s1391_s26 }
  0x41   :  { %p1398_p2 = por %p1397_p1, %p1396_p0 }
  0x43   :  { %p1399_p3 = pnand %p1398_p2, %p1392_p13 }
  0x45   :  { %1402 = shalt.err (!%p1399_p3)
}
  0x46   :  { %78 = dma.hbm_to_vmem [thread:$0]  %s2009_s9, 4096, %s1557_s1, [#allocation18], %s1453_s5, %s1453_s5, %s1454_s16  }
  0x47   :  { %1433 = dma.done.wait [#allocation12], 1024  }
  0x48   :  { %1434 = vsyncadd [#allocation12], 4294966272 }
  0x49   :  { %1435 = dma.done.wait [#allocation15], 12288  }
  0x4a   :  { %1436 = vsyncadd [#allocation15], 4294955008 }
  0x4b   :  { %1437 = dma.done.wait [#allocation18], 4096  }
  0x4c   :  { %1438 = vsyncadd [#allocation18], 4294963200  ;;  %vm192_vm0 = vcmask 7168   ;;  %v1457_v0 = vmov -1e+30   ;;  %v2011_v1 = vmov 0.0  }
  0x4d   :  { %193 = vst.msk [vmem:[#allocation6] sm:$0xff] %vm192_vm0, %v1457_v0  ;;  %194 = vst.msk [vmem:[#allocation7] sm:$0xff] %vm192_vm0, %v2011_v1  ;;  %v1602_v2 = vld [vmem:[%s2004_s4] sm:$0xff]  ;;  %v1611_v5 = vld [vmem:[#allocation14 + $0x8] sm:$0xff]  ;;  %p866_p4 = scmp.le.s32.totalorder %s2000_s0, 0 }
  0x4e   :  { %195 = vst [vmem:[#allocation4] sm:$0xff] %v2011_v1  ;;  %196 = vst [vmem:[#allocation5] sm:$0xff] %v2011_v1  ;;  %v1607_v3 = vld [vmem:[%s2002_s2] sm:$0xff]  ;;  %v1613_v6 = vld [vmem:[#allocation14 + $0x10] sm:$0xff]  ;;  %s1818_s12 = smov (!%p866_p4), 0  }
  0x4f   :  { %2014 = vst [vmem:[#allocation24_spill] sm:$0xff] %v1602_v2  ;;  %v1609_v4 = vld [vmem:[#allocation14] sm:$0xff]  ;;  %2016 = vst [vmem:[#allocation26_spill] sm:$0xff] %v1611_v5  ;;  %v1615_v7 = vld [vmem:[#allocation14 + $0x18] sm:$0xff] }
  0x50   :  { %2015 = vst [vmem:[#allocation25_spill] sm:$0xff] %v1609_v4  ;;  %2017 = vst [vmem:[#allocation27_spill] sm:$0xff] %v1613_v6  ;;  %v1617_v8 = vld [vmem:[#allocation14 + $0x20] sm:$0xff]  ;;  %v1619_v9 = vld [vmem:[#allocation14 + $0x28] sm:$0xff] }
  0x51   :  { %2018 = vst [vmem:[#allocation28_spill] sm:$0xff] %v1615_v7  ;;  %2019 = vst [vmem:[#allocation29_spill] sm:$0xff] %v1617_v8  ;;  %v1621_v10 = vld [vmem:[#allocation14 + $0x30] sm:$0xff]  ;;  %v1623_v11 = vld [vmem:[#allocation14 + $0x38] sm:$0xff] }
  0x52   :  { %2020 = vst [vmem:[#allocation30_spill] sm:$0xff] %v1619_v9  ;;  %2021 = vst [vmem:[#allocation31_spill] sm:$0xff] %v1621_v10  ;;  %v1625_v12 = vld [vmem:[#allocation14 + $0x40] sm:$0xff]  ;;  %v1627_v13 = vld [vmem:[#allocation14 + $0x48] sm:$0xff] }
  0x53   :  { %2022 = vst [vmem:[#allocation32_spill] sm:$0xff] %v1623_v11  ;;  %2023 = vst [vmem:[#allocation33_spill] sm:$0xff] %v1625_v12  ;;  %v1629_v14 = vld [vmem:[#allocation14 + $0x50] sm:$0xff]  ;;  %v1631_v15 = vld [vmem:[#allocation14 + $0x58] sm:$0xff] }
  0x54   :  { %2024 = vst [vmem:[#allocation34_spill] sm:$0xff] %v1627_v13  ;;  %2025 = vst [vmem:[#allocation35_spill] sm:$0xff] %v1629_v14  ;;  %v1633_v16 = vld [vmem:[#allocation14 + $0x60] sm:$0xff]  ;;  %v1635_v17 = vld [vmem:[#allocation14 + $0x68] sm:$0xff] }
  0x55   :  { %v1637_v18 = vld [vmem:[#allocation14 + $0x70] sm:$0xff]  ;;  %v1639_v19 = vld [vmem:[#allocation14 + $0x78] sm:$0xff]  ;;  %v1641_v20 = vld [vmem:[#allocation14 + $0x80] sm:$0xff] }
  0x56   :  { %v1643_v21 = vld [vmem:[#allocation14 + $0x88] sm:$0xff]  ;;  %v1645_v22 = vld [vmem:[#allocation14 + $0x90] sm:$0xff]  ;;  %v1647_v23 = vld [vmem:[#allocation14 + $0x98] sm:$0xff] }
  0x57   :  { %v1649_v24 = vld [vmem:[#allocation14 + $0xa0] sm:$0xff]  ;;  %v1651_v25 = vld [vmem:[#allocation14 + $0xa8] sm:$0xff]  ;;  %v1653_v26 = vld [vmem:[#allocation14 + $0xb0] sm:$0xff] }
  0x58   :  { %v1655_v27 = vld [vmem:[#allocation14 + $0xb8] sm:$0xff]  ;;  %v1657_v28 = vld [vmem:[#allocation14 + $0xc0] sm:$0xff]  ;;  %v1659_v29 = vld [vmem:[#allocation14 + $0xc8] sm:$0xff] }
  0x59   :  { %v1661_v30 = vld [vmem:[#allocation14 + $0xd0] sm:$0xff]  ;;  %v1663_v31 = vld [vmem:[#allocation14 + $0xd8] sm:$0xff]  ;;  %v1665_v32 = vld [vmem:[#allocation14 + $0xe0] sm:$0xff] }
  0x5a   :  { %v1667_v33 = vld [vmem:[#allocation14 + $0xe8] sm:$0xff]  ;;  %v1669_v34 = vld [vmem:[#allocation14 + $0xf0] sm:$0xff]  ;;  %v1671_v35 = vld [vmem:[#allocation14 + $0xf8] sm:$0xff] }
  0x5b   :  { %v1673_v36 = vld [vmem:[#allocation14 + $0x100] sm:$0xff]  ;;  %v1675_v37 = vld [vmem:[#allocation14 + $0x108] sm:$0xff]  ;;  %v1677_v38 = vld [vmem:[#allocation14 + $0x110] sm:$0xff] }
  0x5c   :  { %v1679_v39 = vld [vmem:[#allocation14 + $0x118] sm:$0xff]  ;;  %v1681_v40 = vld [vmem:[#allocation14 + $0x120] sm:$0xff]  ;;  %v1683_v41 = vld [vmem:[#allocation14 + $0x128] sm:$0xff] }
  0x5d   :  { %v1685_v42 = vld [vmem:[#allocation14 + $0x130] sm:$0xff]  ;;  %v1687_v43 = vld [vmem:[#allocation14 + $0x138] sm:$0xff]  ;;  %v1689_v44 = vld [vmem:[#allocation14 + $0x140] sm:$0xff] }
  0x5e   :  { %v1691_v45 = vld [vmem:[#allocation14 + $0x148] sm:$0xff]  ;;  %v1693_v46 = vld [vmem:[#allocation14 + $0x150] sm:$0xff]  ;;  %v1695_v47 = vld [vmem:[#allocation14 + $0x158] sm:$0xff] }
  0x5f   :  { %v1697_v48 = vld [vmem:[#allocation14 + $0x160] sm:$0xff]  ;;  %v1699_v49 = vld [vmem:[#allocation14 + $0x168] sm:$0xff]  ;;  %v1701_v50 = vld [vmem:[#allocation14 + $0x170] sm:$0xff] }
  0x60   :  { %v1703_v51 = vld [vmem:[#allocation14 + $0x178] sm:$0xff]  ;;  %v1705_v52 = vld [vmem:[#allocation16] sm:$0xff]  ;;  %v1707_v53 = vld [vmem:[#allocation16 + $0x8] sm:$0xff] }
  0x61   :  { %v1709_v54 = vld [vmem:[#allocation16 + $0x10] sm:$0xff]  ;;  %v1711_v55 = vld [vmem:[#allocation16 + $0x18] sm:$0xff]  ;;  %v1713_v56 = vld [vmem:[#allocation16 + $0x20] sm:$0xff] }
  0x62   :  { %2026 = vst [vmem:[#allocation36_spill] sm:$0xff] %v1709_v54  ;;  %2027 = vst [vmem:[#allocation37_spill] sm:$0xff] %v1711_v55  ;;  %v1715_v57 = vld [vmem:[#allocation16 + $0x28] sm:$0xff]  ;;  %v1717_v58 = vld [vmem:[#allocation16 + $0x30] sm:$0xff] }
  0x63   :  { %2028 = vst [vmem:[#allocation38_spill] sm:$0xff] %v1715_v57  ;;  %2029 = vst [vmem:[#allocation39_spill] sm:$0xff] %v1717_v58  ;;  %v1719_v59 = vld [vmem:[#allocation16 + $0x38] sm:$0xff]  ;;  %v1721_v60 = vld [vmem:[#allocation16 + $0x40] sm:$0xff] }
  0x64   :  { %2030 = vst [vmem:[#allocation40_spill] sm:$0xff] %v1719_v59  ;;  %2031 = vst [vmem:[#allocation41_spill] sm:$0xff] %v1721_v60  ;;  %v1723_v61 = vld [vmem:[#allocation16 + $0x48] sm:$0xff]  ;;  %v1725_v62 = vld [vmem:[#allocation16 + $0x50] sm:$0xff] }
  0x65   :  { %2032 = vst [vmem:[#allocation42_spill] sm:$0xff] %v1723_v61  ;;  %2033 = vst [vmem:[#allocation43_spill] sm:$0xff] %v1725_v62  ;;  %v1727_v63 = vld [vmem:[#allocation16 + $0x58] sm:$0xff]  ;;  %v1729_v0 = vld [vmem:[#allocation16 + $0x60] sm:$0xff] }
  0x66   :  { %2034 = vst [vmem:[#allocation44_spill] sm:$0xff] %v1727_v63  ;;  %2035 = vst [vmem:[#allocation45_spill] sm:$0xff] %v1729_v0  ;;  %v1731_v1 = vld [vmem:[#allocation16 + $0x68] sm:$0xff]  ;;  %v1733_v54 = vld [vmem:[#allocation16 + $0x70] sm:$0xff] }
  0x67   :  { %2036 = vst [vmem:[#allocation46_spill] sm:$0xff] %v1731_v1  ;;  %2037 = vst [vmem:[#allocation47_spill] sm:$0xff] %v1733_v54  ;;  %v1735_v55 = vld [vmem:[#allocation16 + $0x78] sm:$0xff]  ;;  %v1737_v57 = vld [vmem:[#allocation16 + $0x80] sm:$0xff] }
  0x68   :  { %2038 = vst [vmem:[#allocation48_spill] sm:$0xff] %v1735_v55  ;;  %2039 = vst [vmem:[#allocation49_spill] sm:$0xff] %v1737_v57  ;;  %v1739_v58 = vld [vmem:[#allocation16 + $0x88] sm:$0xff]  ;;  %v1741_v59 = vld [vmem:[#allocation16 + $0x90] sm:$0xff] }
  0x69   :  { %2040 = vst [vmem:[#allocation50_spill] sm:$0xff] %v1739_v58  ;;  %2041 = vst [vmem:[#allocation51_spill] sm:$0xff] %v1741_v59  ;;  %v1743_v60 = vld [vmem:[#allocation16 + $0x98] sm:$0xff]  ;;  %v1745_v61 = vld [vmem:[#allocation16 + $0xa0] sm:$0xff] }
  0x6a   :  { %2042 = vst [vmem:[#allocation52_spill] sm:$0xff] %v1743_v60  ;;  %2043 = vst [vmem:[#allocation53_spill] sm:$0xff] %v1745_v61  ;;  %v1747_v62 = vld [vmem:[#allocation16 + $0xa8] sm:$0xff]  ;;  %v1749_v63 = vld [vmem:[#allocation16 + $0xb0] sm:$0xff] }
  0x6b   :  { %2044 = vst [vmem:[#allocation54_spill] sm:$0xff] %v1747_v62  ;;  %2045 = vst [vmem:[#allocation55_spill] sm:$0xff] %v1749_v63  ;;  %v1751_v0 = vld [vmem:[#allocation16 + $0xb8] sm:$0xff]  ;;  %v1753_v1 = vld [vmem:[#allocation16 + $0xc0] sm:$0xff] }
  0x6c   :  { %2046 = vst [vmem:[#allocation56_spill] sm:$0xff] %v1751_v0  ;;  %2047 = vst [vmem:[#allocation57_spill] sm:$0xff] %v1753_v1  ;;  %v1755_v54 = vld [vmem:[#allocation16 + $0xc8] sm:$0xff]  ;;  %v1757_v55 = vld [vmem:[#allocation16 + $0xd0] sm:$0xff] }
  0x6d   :  { %2048 = vst [vmem:[#allocation58_spill] sm:$0xff] %v1755_v54  ;;  %2049 = vst [vmem:[#allocation59_spill] sm:$0xff] %v1757_v55  ;;  %v1759_v57 = vld [vmem:[#allocation16 + $0xd8] sm:$0xff]  ;;  %v1761_v58 = vld [vmem:[#allocation16 + $0xe0] sm:$0xff] }
  0x6e   :  { %2050 = vst [vmem:[#allocation60_spill] sm:$0xff] %v1759_v57  ;;  %2051 = vst [vmem:[#allocation61_spill] sm:$0xff] %v1761_v58  ;;  %v1763_v59 = vld [vmem:[#allocation16 + $0xe8] sm:$0xff]  ;;  %v1765_v60 = vld [vmem:[#allocation16 + $0xf0] sm:$0xff] }
  0x6f   :  { %2052 = vst [vmem:[#allocation62_spill] sm:$0xff] %v1763_v59  ;;  %2053 = vst [vmem:[#allocation63_spill] sm:$0xff] %v1765_v60  ;;  %v1767_v61 = vld [vmem:[#allocation16 + $0xf8] sm:$0xff]  ;;  %v1769_v62 = vld [vmem:[#allocation16 + $0x100] sm:$0xff] }
  0x70   :  { %2054 = vst [vmem:[#allocation64_spill] sm:$0xff] %v1767_v61  ;;  %2055 = vst [vmem:[#allocation65_spill] sm:$0xff] %v1769_v62  ;;  %v1771_v63 = vld [vmem:[#allocation16 + $0x108] sm:$0xff]  ;;  %v1773_v0 = vld [vmem:[#allocation16 + $0x110] sm:$0xff] }
  0x71   :  { %2056 = vst [vmem:[#allocation66_spill] sm:$0xff] %v1771_v63  ;;  %2057 = vst [vmem:[#allocation67_spill] sm:$0xff] %v1773_v0  ;;  %v1775_v1 = vld [vmem:[#allocation16 + $0x118] sm:$0xff]  ;;  %v1777_v54 = vld [vmem:[#allocation16 + $0x120] sm:$0xff] }
  0x72   :  { %2058 = vst [vmem:[#allocation68_spill] sm:$0xff] %v1775_v1  ;;  %2059 = vst [vmem:[#allocation69_spill] sm:$0xff] %v1777_v54  ;;  %v1779_v55 = vld [vmem:[#allocation16 + $0x128] sm:$0xff]  ;;  %v1781_v57 = vld [vmem:[#allocation16 + $0x130] sm:$0xff]  ;;  %858 = sbr.rel (%p866_p4) target bundleno = 372 (0x174), region = 85 }
  0x73   :  { %2060 = vst [vmem:[#allocation70_spill] sm:$0xff] %v1781_v57  ;;  %v1783_v58 = vld [vmem:[#allocation16 + $0x138] sm:$0xff]  ;;  %v1785_v59 = vld [vmem:[#allocation16 + $0x140] sm:$0xff]  ;;  %v1787_v60 = vld [vmem:[#allocation16 + $0x148] sm:$0xff] }
  0x74   :  { %2061 = vst [vmem:[#allocation71_spill] sm:$0xff] %v1787_v60  ;;  %v1789_v61 = vld [vmem:[#allocation16 + $0x150] sm:$0xff]  ;;  %v1791_v62 = vld [vmem:[#allocation16 + $0x158] sm:$0xff]  ;;  %v1793_v63 = vld [vmem:[#allocation16 + $0x160] sm:$0xff] }
  0x75   :  { %2062 = vst [vmem:[#allocation72_spill] sm:$0xff] %v1789_v61  ;;  %2063 = vst [vmem:[#allocation73_spill] sm:$0xff] %v1793_v63  ;;  %v1795_v0 = vld [vmem:[#allocation16 + $0x168] sm:$0xff]  ;;  %v1797_v1 = vld [vmem:[#allocation16 + $0x170] sm:$0xff] }
  0x76   :  { %2064 = vst [vmem:[#allocation74_spill] sm:$0xff] %v1795_v0  ;;  %2065 = vst [vmem:[#allocation75_spill] sm:$0xff] %v1797_v1  ;;  %v1799_v54 = vld [vmem:[#allocation16 + $0x178] sm:$0xff]  ;;  %v1804_v57 = vld [vmem:[%s2007_s7] sm:$0x7] }
  0x77   :  { %2066 = vst [vmem:[#allocation76_spill] sm:$0xff] %v1799_v54  ;;  %v1809_v60 = vld [vmem:[%s2008_s8] ss:$0 sm:$0xff] }
  0x78   :  { %2067 = vst [vmem:[#allocation77_spill] sm:$0xff] %v1809_v60 }
  0x79 LB: > { %v2068_v5 = vld [vmem:[#allocation26_spill] sm:$0xff]  ;;  %v2069_v8 = vld [vmem:[#allocation29_spill] sm:$0xff]  ;;  %v2071_v7 = vld [vmem:[#allocation28_spill] sm:$0xff]  ;;  %v1459_v0 = vmov 0.0|0.0   ;;  %s867_s7 = sshll.u32 %s1443_s12, 3  ;;  %vm1461_vm1 = vmmov 0   ;;  %s1443_s12 = sphi %s1818_s12, %s200_s12  }
  0x7a   : > { %v1085_v60 = vpack.c.bf16 %v2069_v8, %v2068_v5  ;;  %v2070_v4 = vld [vmem:[#allocation25_spill] sm:$0xff]  ;;  %v2072_v6 = vld [vmem:[#allocation27_spill] sm:$0xff]  ;;  %v2073_v9 = vld [vmem:[#allocation30_spill] sm:$0xff]  ;;  %1117 = vmatprep.subr.bf16.mxu1 %v1459_v0  ;;  %v1093_v5 = vpack.c.bf16 %v1641_v20, %v1635_v17  ;;  %s204_s8 = scalar_lea.vmem [#allocation11], %s867_s7  ;;  %s388_s13 = scalar_lea.vmem [#allocation3], %s867_s7 }
  0x7b   : > { %v1087_v54 = vpack.c.bf16 %v2071_v7, %v2070_v4  ;;  %v1118_v63 = vpack.c.bf16 %v2073_v9, %v2072_v6  ;;  %v2074_v11 = vld [vmem:[#allocation32_spill] sm:$0xff]  ;;  %v2075_v14 = vld [vmem:[#allocation35_spill] sm:$0xff]  ;;  %v2076_v12 = vld [vmem:[#allocation33_spill] sm:$0xff]  ;;  %v1460_v6 = vmov 0.0   ;;  %v1097_v7 = vpack.c.bf16 %v1653_v26, %v1647_v23  ;;  %s875_s3 = smul.u32 24, %s1443_s12 }
  0x7c   : > { %v1089_v61 = vpack.c.bf16 %v2075_v14, %v2074_v11  ;;  %1086 = vmatprep.subr.bf16.mxu0 %v1085_v60  ;;  %v1121_v1 = vpack.c.bf16 %v1631_v15, %v2076_v12  ;;  %v2077_v10 = vld [vmem:[#allocation31_spill] sm:$0xff]  ;;  %v2078_v13 = vld [vmem:[#allocation34_spill] sm:$0xff]  ;;  %286 = vmatprep.mubr.f32.mxu0 %v1460_v6  ;;  %v1124_v60 = vpack.c.bf16 %v1643_v21, %v1637_v18 }
  0x7d   : > { %1119 = vmatpush3.bf16.msra.mxu1 %v1118_v63  ;;  %1088 = vmatpush1.bf16.msra.mxu0 %v1087_v54  ;;  %v1091_v4 = vpack.c.bf16 %v2078_v13, %v2077_v10  ;;  %v205_v63 = vld [vmem:[%s204_s8] sm:$0xff]  ;;  %v1095_v54 = vpack.c.bf16 %v1639_v19, %v1633_v16  ;;  %s365_s29 = scalar_lea.vmem [#allocation2], %s875_s3 }
  0x7e   : > { %1120 = vmatprep.subr.bf16.mxu1 %v1459_v0  ;;  %1090 = vmatprep.subr.bf16.mxu0 %v1089_v61  ;;  %v369_v61 = vmul.f32 %v205_v63, %v1602_v2 }
  0x7f   : > { %977 = vmatprep.mubr.msk.f32.mxu1 %vm1461_vm1, %v1460_v6  ;;  %v1101_v6 = vpack.c.bf16 %v1665_v32, %v1659_v29 }
  0x80   : > { %370 = vadd.xlane.f32.xlu0 %v369_v61  ;;  %v1107_v61 = vpack.c.bf16 %v1675_v37, %v1669_v34 }
  0x81   : > { %1122 = vmatpush3.bf16.msra.mxu1 %v1121_v1  ;;  %1092 = vmatpush1.bf16.msra.mxu0 %v1091_v4  ;;  %v1127_v1 = vpack.c.bf16 %v1655_v27, %v1649_v24  ;;  %v1099_v4 = vpack.c.bf16 %v1651_v25, %v1645_v22 }
  0x82   : > { %1123 = vmatprep.subr.bf16.mxu1 %v1459_v0  ;;  %1094 = vmatprep.subr.bf16.mxu0 %v1093_v5  ;;  %v1130_v5 = vpack.c.bf16 %v1667_v33, %v1661_v30 }
  0x85   : > { %1125 = vmatpush3.bf16.msra.mxu1 %v1124_v60  ;;  %1096 = vmatpush1.bf16.msra.mxu0 %v1095_v54  ;;  %v1103_v60 = vpack.c.bf16 %v1663_v31, %v1657_v28  ;;  %v1105_v54 = vpack.c.bf16 %v1677_v38, %v1671_v35 }
  0x86   : > { %1126 = vmatprep.subr.bf16.mxu1 %v1459_v0  ;;  %1098 = vmatprep.subr.bf16.mxu0 %v1097_v7  ;;  %v1133_v7 = vpack.c.bf16 %v1679_v39, %v1673_v36 }
  0x89   : > { %1128 = vmatpush3.bf16.msra.mxu1 %v1127_v1  ;;  %1100 = vmatpush1.bf16.msra.mxu0 %v1099_v4  ;;  %v1109_v1 = vpack.c.bf16 %v1689_v44, %v1683_v41  ;;  %v1136_v4 = vpack.c.bf16 %v1691_v45, %v1685_v42 }
  0x8a   : > { %1129 = vmatprep.subr.bf16.mxu1 %v1459_v0  ;;  %1102 = vmatprep.subr.bf16.mxu0 %v1101_v6  ;;  %v1111_v6 = vpack.c.bf16 %v1687_v43, %v1681_v40 }
  0x8d   : > { %1131 = vmatpush3.bf16.msra.mxu1 %v1130_v5  ;;  %1104 = vmatpush1.bf16.msra.mxu0 %v1103_v60  ;;  %v1113_v5 = vpack.c.bf16 %v1701_v50, %v1695_v47  ;;  %v1139_v60 = vpack.c.bf16 %v1703_v51, %v1697_v48 }
  0x8e   : > { %1132 = vmatprep.subr.bf16.mxu1 %v1459_v0  ;;  %1106 = vmatprep.subr.bf16.mxu0 %v1105_v54  ;;  %v1115_v54 = vpack.c.bf16 %v1699_v49, %v1693_v46 }
  0x91   : > { %1134 = vmatpush3.bf16.msra.mxu1 %v1133_v7  ;;  %1108 = vmatpush1.bf16.msra.mxu0 %v1107_v61  ;;  %v372_v7 = vstv %s1443_s12  ;;  %v375_v61 = vld [vmem:[#allocation6] sm:$0xff]  ;;  %s200_s12 = sadd.s32 1, %s1443_s12  }
  0x92   : > { %1135 = vmatprep.subr.bf16.mxu1 %v1459_v0  ;;  %1110 = vmatprep.subr.bf16.mxu0 %v1109_v1  ;;  %vm373_vm2 = vcmp.lt.s32.totalorder %v372_v7, %v1607_v3  ;;  %p199_p5 = scmp.ge.s32.totalorder %s200_s12, %s2000_s0 }
  0x95   : > { %1137 = vmatpush3.bf16.msra.mxu1 %v1136_v4  ;;  %1112 = vmatpush1.bf16.msra.mxu0 %v1111_v6 }
  0x96   : > { %1138 = vmatprep.subr.bf16.mxu1 %v1459_v0  ;;  %1114 = vmatprep.subr.bf16.mxu0 %v1113_v5 }
  0x99   : > { %1140 = vmatpush3.bf16.msra.mxu1 %v1139_v60  ;;  %1116 = vmatpush1.bf16.msra.mxu0 %v1115_v54 }
  0x9c   : > { %978 = vmatmul.mubr.f32.vlgmr.msra.gmra.mrb[0].mxu1 %v205_v63  ;;  %287 = vmatmul.mubr.f32.vlgmr.msra.gmra.mrb[0].mxu0 %v205_v63  ;;  %v377_v63 = vld [vmem:[#allocation7] sm:$0xff] }
 0x10d   : > { %v371_v1 = vpop.xlane.xlu0 %370 }
 0x10e   : > { %v374_v4 = vsel %vm373_vm2, %v371_v1, -1e+30  ;;  %v207_v1 = vlaneseq }
 0x10f   : > { %v376_v8 = vmax.f32 %v375_v61, %v374_v4  ;;  %389 = vst.msk [vmem:[%s388_s13] sm:$0xff] %vm192_vm0, %v374_v4 }
 0x110   : > { %v208_v11 = vshrl.u32 %v207_v1, 7 }
 0x111   : > { %v378_v0 = vsub.f32 %v375_v61, %v376_v8  ;;  %v382_v6 = vsub.f32 %v374_v4, %v376_v8  ;;  %387 = vst.msk [vmem:[#allocation6] sm:$0xff] %vm192_vm0, %v376_v8 }
 0x112   : > { %v217_v12 = vsub.s32 2, %v208_v11  ;;  %v209_v13 = vsub.s32 0, %v208_v11  ;;  %v213_v61 = vsub.s32 1, %v208_v11 }
 0x113   : > { %v379_v5 = vmul.f32 1.442695, %v378_v0  ;;  %v383_v60 = vmul.f32 1.442695, %v382_v6 }
 0x114   : > { %v218_v8 = vrot.slane %v1804_v57, %v217_v12  ;;  %v210_v4 = vrot.slane %v1804_v57, %v209_v13  ;;  %v214_v0 = vrot.slane %v1804_v57, %v213_v61 }
 0x115   : > { %1282 = vpow2.f32 %v379_v5 }
 0x116   : > { %1284 = vpow2.f32 %v383_v60 }
 0x11f   : > { %v1283_v54 = vpop.eup %1282 }
 0x120   : > { %v1285_v7 = vpop.eup %1284  ;;  %v381_v9 = vmul.f32 %v1283_v54, %v377_v63 }
 0x122   : > { %v385_v10 = vadd.f32 %v1285_v7, %v381_v9 }
 0x124   : > { %386 = vst.msk [vmem:[#allocation7] sm:$0xff] %vm192_vm0, %v385_v10 }
 0x16d   :  { %202 = sbr.rel (!%p199_p5) target bundleno = 121 (0x79), region = 91 }
 0x16f   : > { %v359_v6 = vpop.f32.mrb[0].mxu1  ;;  %v288_v5 = vpop.f32.mrb[0].mxu0 }
 0x170   : > { %v360_v60 = vadd.f32 %v359_v6, %v218_v8  ;;  %v979_v14 = vpop.f32.mrb[1].mxu1  ;;  %v289_v63 = vadd.f32 %v288_v5, %v210_v4  ;;  %v290_v9 = vpop.f32.mrb[1].mxu0 }
 0x171   : > { %v291_v10 = vadd.f32 %v290_v9, %v214_v0 }
 0x172   : > { %368 = vst [vmem:[%s365_s29 + $0x10] sm:$0xff] %v360_v60  ;;  %366 = vst [vmem:[%s365_s29] sm:$0xff] %v289_v63 }
 0x173   : > { %367 = vst [vmem:[%s365_s29 + $0x8] sm:$0xff] %v291_v10 }
 0x174 PF:  { %v391_v11 = vld [vmem:[#allocation7] sm:$0xff]  ;;  %v395_v12 = vld [vmem:[#allocation3] sm:$0xff]  ;;  %v403_v13 = vld [vmem:[#allocation6] sm:$0xff]  ;;  %vm390_vm3 = vcmp.gt.s32.totalorder %v1607_v3, 0  ;;  %s1905_s19 = smov (!%p866_p4), 0  }
 0x175   :  { %1286 = vrcp.f32 %v391_v11  ;;  %v404_v14 = vsub.f32 %v395_v12, %v403_v13  ;;  %v396_v54 = vld [vmem:[#allocation3 + $0x8] sm:$0xff]  ;;  %v397_v7 = vld [vmem:[#allocation3 + $0x10] sm:$0xff]  ;;  %v398_v1 = vld [vmem:[#allocation3 + $0x18] sm:$0xff] }
 0x176   :  { %v405_v61 = vsub.f32 %v396_v54, %v403_v13  ;;  %v406_v8 = vsub.f32 %v397_v7, %v403_v13  ;;  %v407_v4 = vsub.f32 %v398_v1, %v403_v13  ;;  %v399_v0 = vld [vmem:[#allocation3 + $0x20] sm:$0xff]  ;;  %v400_v6 = vld [vmem:[#allocation3 + $0x28] sm:$0xff]  ;;  %v401_v5 = vld [vmem:[#allocation3 + $0x30] sm:$0xff] }
 0x177   :  { %v412_v60 = vmul.f32 1.442695, %v404_v14  ;;  %v408_v63 = vsub.f32 %v399_v0, %v403_v13  ;;  %v409_v9 = vsub.f32 %v400_v6, %v403_v13  ;;  %v410_v10 = vsub.f32 %v401_v5, %v403_v13  ;;  %v402_v2 = vld [vmem:[#allocation3 + $0x38] sm:$0xff] }
 0x178   :  { %v414_v15 = vmul.f32 1.442695, %v405_v61  ;;  %v416_v16 = vmul.f32 1.442695, %v406_v8  ;;  %v418_v17 = vmul.f32 1.442695, %v407_v4  ;;  %v411_v18 = vsub.f32 %v402_v2, %v403_v13 }
 0x179   :  { %1288 = vpow2.f32 %v412_v60  ;;  %v420_v19 = vmul.f32 1.442695, %v408_v63  ;;  %v422_v20 = vmul.f32 1.442695, %v409_v9  ;;  %v424_v21 = vmul.f32 1.442695, %v410_v10 }
 0x17a   :  { %1290 = vpow2.f32 %v414_v15  ;;  %v426_v22 = vmul.f32 1.442695, %v411_v18 }
 0x17b   :  { %1292 = vpow2.f32 %v416_v16 }
 0x17c   :  { %1294 = vpow2.f32 %v418_v17 }
 0x17d   :  { %1296 = vpow2.f32 %v420_v19 }
 0x17e   :  { %1298 = vpow2.f32 %v422_v20 }
 0x17f   :  { %v1287_v23 = vpop.eup %1286  ;;  %1300 = vpow2.f32 %v424_v21 }
 0x180   :  { %1302 = vpow2.f32 %v426_v22  ;;  %v394_v24 = vsel %vm390_vm3, %v1287_v23, 0.0 }
 0x183   :  { %v1289_v25 = vpop.eup %1288 }
 0x184   :  { %v1291_v26 = vpop.eup %1290  ;;  %v428_v27 = vmul.f32 %v1289_v25, %v394_v24 }
 0x185   :  { %v1293_v2 = vpop.eup %1292  ;;  %v429_v28 = vmul.f32 %v1291_v26, %v394_v24 }
 0x186   :  { %v1295_v29 = vpop.eup %1294  ;;  %436 = vst.msk [vmem:[#allocation3] sm:$0xff] %vm192_vm0, %v428_v27  ;;  %v430_v30 = vmul.f32 %v1293_v2, %v394_v24 }
 0x187   :  { %v1297_v31 = vpop.eup %1296  ;;  %437 = vst.msk [vmem:[#allocation3 + $0x8] sm:$0xff] %vm192_vm0, %v429_v28  ;;  %v431_v32 = vmul.f32 %v1295_v29, %v394_v24  ;;  %863 = sbr.rel (%p866_p4) target bundleno = 696 (0x2b8), region = 96 }
 0x188   :  { %v1299_v33 = vpop.eup %1298  ;;  %438 = vst.msk [vmem:[#allocation3 + $0x10] sm:$0xff] %vm192_vm0, %v430_v30  ;;  %v432_v34 = vmul.f32 %v1297_v31, %v394_v24 }
 0x189   :  { %v1301_v35 = vpop.eup %1300  ;;  %439 = vst.msk [vmem:[#allocation3 + $0x18] sm:$0xff] %vm192_vm0, %v431_v32  ;;  %v433_v36 = vmul.f32 %v1299_v33, %v394_v24 }
 0x18a   :  { %v1303_v37 = vpop.eup %1302  ;;  %440 = vst.msk [vmem:[#allocation3 + $0x20] sm:$0xff] %vm192_vm0, %v432_v34  ;;  %v434_v38 = vmul.f32 %v1301_v35, %v394_v24 }
 0x18b   :  { %441 = vst.msk [vmem:[#allocation3 + $0x28] sm:$0xff] %vm192_vm0, %v433_v36  ;;  %v435_v39 = vmul.f32 %v1303_v37, %v394_v24 }
 0x18c   :  { %442 = vst.msk [vmem:[#allocation3 + $0x30] sm:$0xff] %vm192_vm0, %v434_v38 }
 0x18d   :  { %443 = vst.msk [vmem:[#allocation3 + $0x38] sm:$0xff] %vm192_vm0, %v435_v39 }
 0x18e LB: > { %v1141_v40 = vpack.c.bf16 %v1713_v56, %v1707_v53  ;;  %v2079_v41 = vld [vmem:[#allocation37_spill] sm:$0xff]  ;;  %v2080_v43 = vld [vmem:[#allocation40_spill] sm:$0xff]  ;;  %v2081_v44 = vld [vmem:[#allocation43_spill] sm:$0xff]  ;;  %s874_s20 = sshll.u32 %s1447_s19, 3  ;;  %v1462_v13 = vmov 0.0|0.0   ;;  %v1463_v1 = vmov 0.0   ;;  %v638_v5 = vstv %s1447_s19  ;;  %s1447_s19 = sphi %s1905_s19, %s447_s19  }
 0x18f   : > { %v1143_v42 = vpack.c.bf16 %v2079_v41, %v1705_v52  ;;  %v1145_v45 = vpack.c.bf16 %v2081_v44, %v2080_v43  ;;  %v2082_v46 = vld [vmem:[#allocation39_spill] sm:$0xff]  ;;  %v2083_v47 = vld [vmem:[#allocation42_spill] sm:$0xff]  ;;  %v2084_v49 = vld [vmem:[#allocation36_spill] sm:$0xff]  ;;  %1173 = vmatprep.subr.bf16.mxu1 %v1462_v13  ;;  %521 = vmatprep.mubr.f32.mxu0 %v1463_v1  ;;  %s628_s21 = scalar_lea.vmem [#allocation3], %s874_s20  ;;  %vm1464_vm4 = vmmov 0   ;;  %v1465_v6 = vmov 0  }
 0x190   : > { %1142 = vmatprep.subr.bf16.mxu0 %v1141_v40  ;;  %v1147_v48 = vpack.c.bf16 %v2083_v47, %v2082_v46  ;;  %v2085_v50 = vld [vmem:[#allocation38_spill] sm:$0xff]  ;;  %v2087_v11 = vld [vmem:[#allocation49_spill] sm:$0xff]  ;;  %v2089_v54 = vld [vmem:[#allocation44_spill] sm:$0xff]  ;;  %1012 = vmatprep.mubr.msk.f32.mxu1 %vm1464_vm4, %v1463_v1  ;;  %vm639_vm5 = vcmp.lt.s32.totalorder %v638_v5, %v1607_v3  ;;  %v1165_v38 = vpack.c.bf16 %v1785_v59, %v1779_v55  ;;  %s876_s23 = smul.u32 24, %s1447_s19  ;;  %s447_s19 = sadd.s32 1, %s1447_s19  }
 0x191   : > { %1144 = vmatpush1.bf16.msra.mxu0 %v1143_v42  ;;  %v1174_v51 = vpack.c.bf16 %v2085_v50, %v2084_v49  ;;  %v2086_v57 = vld [vmem:[#allocation46_spill] sm:$0xff]  ;;  %v2088_v14 = vld [vmem:[#allocation41_spill] sm:$0xff]  ;;  %v2091_v4 = vld [vmem:[#allocation48_spill] sm:$0xff]  ;;  %1304 = vset.pattern.permute.xlu0 %v1465_v6  ;;  %v640_v17 = vsel %vm639_vm5, 1, %v1465_v6  ;;  %p446_p6 = scmp.ge.s32.totalorder %s447_s19, %s2000_s0 }
 0x192   : > { %1146 = vmatprep.subr.bf16.mxu0 %v1145_v45  ;;  %v1149_v12 = vpack.c.bf16 %v2087_v11, %v2086_v57  ;;  %v1177_v7 = vpack.c.bf16 %v2089_v54, %v2088_v14  ;;  %v2090_v8 = vld [vmem:[#allocation45_spill] sm:$0xff]  ;;  %v2092_v60 = vld [vmem:[#allocation52_spill] sm:$0xff]  ;;  %v2093_v63 = vld [vmem:[#allocation55_spill] sm:$0xff]  ;;  %s453_s26 = scalar_lea.vmem [#allocation2], %s876_s23 }
 0x193   : > { %1175 = vmatpush3.bf16.msra.mxu1 %v1174_v51  ;;  %v1151_v0 = vpack.c.bf16 %v2091_v4, %v2090_v8  ;;  %v1153_v9 = vpack.c.bf16 %v2093_v63, %v2092_v60  ;;  %v2094_v10 = vld [vmem:[#allocation47_spill] sm:$0xff]  ;;  %v2095_v15 = vld [vmem:[#allocation50_spill] sm:$0xff]  ;;  %v2099_v22 = vld [vmem:[#allocation61_spill] sm:$0xff] }
 0x194   : > { %v629_v61 = vld [vmem:[%s628_s21] sm:$0xff]  ;;  %1176 = vmatprep.subr.bf16.mxu1 %v1462_v13  ;;  %v1180_v16 = vpack.c.bf16 %v2095_v15, %v2094_v10  ;;  %v2097_v19 = vld [vmem:[#allocation54_spill] sm:$0xff]  ;;  %v2100_v24 = vld [vmem:[#allocation53_spill] sm:$0xff] }
 0x195   : > { %1148 = vmatpush1.bf16.msra.mxu0 %v1147_v48  ;;  %632 = vperm.xlu0 %1304, %v629_v61   ;;  %v2096_v18 = vld [vmem:[#allocation51_spill] sm:$0xff]  ;;  %v2098_v21 = vld [vmem:[#allocation58_spill] sm:$0xff]  ;;  %v2101_v25 = vld [vmem:[#allocation56_spill] sm:$0xff] }
 0x196   : > { %1150 = vmatprep.subr.bf16.mxu0 %v1149_v12  ;;  %v1155_v20 = vpack.c.bf16 %v2097_v19, %v2096_v18  ;;  %v1157_v23 = vpack.c.bf16 %v2099_v22, %v2098_v21  ;;  %v1183_v26 = vpack.c.bf16 %v2101_v25, %v2100_v24  ;;  %v2102_v27 = vld [vmem:[#allocation57_spill] sm:$0xff]  ;;  %v2103_v2 = vld [vmem:[#allocation60_spill] sm:$0xff]  ;;  %v2105_v30 = vld [vmem:[#allocation67_spill] sm:$0xff] }
 0x197   : > { %1178 = vmatpush3.bf16.msra.mxu1 %v1177_v7  ;;  %v1159_v28 = vpack.c.bf16 %v2103_v2, %v2102_v27  ;;  %v2104_v29 = vld [vmem:[#allocation64_spill] sm:$0xff]  ;;  %v2106_v32 = vld [vmem:[#allocation59_spill] sm:$0xff]  ;;  %v2107_v33 = vld [vmem:[#allocation62_spill] sm:$0xff] }
 0x198   : > { %1179 = vmatprep.subr.bf16.mxu1 %v1462_v13  ;;  %v1161_v31 = vpack.c.bf16 %v2105_v30, %v2104_v29  ;;  %v1186_v34 = vpack.c.bf16 %v2107_v33, %v2106_v32  ;;  %v2108_v35 = vld [vmem:[#allocation63_spill] sm:$0xff]  ;;  %v2109_v36 = vld [vmem:[#allocation66_spill] sm:$0xff]  ;;  %v2110_v39 = vld [vmem:[#allocation65_spill] sm:$0xff] }
 0x199   : > { %1152 = vmatpush1.bf16.msra.mxu0 %v1151_v0  ;;  %642 = vperm.xlu0 %1304, %v640_v17   ;;  %v1163_v37 = vpack.c.bf16 %v2109_v36, %v2108_v35  ;;  %v2111_v40 = vld [vmem:[#allocation68_spill] sm:$0xff]  ;;  %v2112_v42 = vld [vmem:[#allocation69_spill] sm:$0xff]  ;;  %v2113_v44 = vld [vmem:[#allocation75_spill] sm:$0xff] }
 0x19a   : > { %1154 = vmatprep.subr.bf16.mxu0 %v1153_v9  ;;  %v1189_v41 = vpack.c.bf16 %v2111_v40, %v2110_v39  ;;  %v1167_v43 = vpack.c.bf16 %v1783_v58, %v2112_v42  ;;  %v1169_v45 = vpack.c.bf16 %v2113_v44, %v1791_v62  ;;  %v2114_v46 = vld [vmem:[#allocation70_spill] sm:$0xff]  ;;  %v2115_v47 = vld [vmem:[#allocation71_spill] sm:$0xff]  ;;  %v2116_v49 = vld [vmem:[#allocation72_spill] sm:$0xff] }
 0x19b   : > { %1181 = vmatpush3.bf16.msra.mxu1 %v1180_v16  ;;  %v1192_v48 = vpack.c.bf16 %v2115_v47, %v2114_v46  ;;  %v2117_v50 = vld [vmem:[#allocation74_spill] sm:$0xff]  ;;  %v2118_v57 = vld [vmem:[#allocation73_spill] sm:$0xff]  ;;  %v2119_v11 = vld [vmem:[#allocation76_spill] sm:$0xff] }
 0x19c   : > { %1182 = vmatprep.subr.bf16.mxu1 %v1462_v13  ;;  %v1171_v51 = vpack.c.bf16 %v2117_v50, %v2116_v49  ;;  %v1195_v12 = vpack.c.bf16 %v2119_v11, %v2118_v57  ;;  %v450_v14 = vld [vmem:[#allocation4] sm:$0xff]  ;;  %v455_v7 = vld [vmem:[%s453_s26 + $0x8] sm:$0xff]  ;;  %v2120_v15 = vld [vmem:[#allocation77_spill] sm:$0xff] }
 0x19d   : > { %1156 = vmatpush1.bf16.msra.mxu0 %v1155_v20  ;;  %v454_v54 = vld [vmem:[%s453_s26] sm:$0xff]  ;;  %v456_v18 = vld [vmem:[%s453_s26 + $0x10] sm:$0xff] }
 0x19e   : > { %1158 = vmatprep.subr.bf16.mxu0 %v1157_v23 }
 0x19f   : > { %1184 = vmatpush3.bf16.msra.mxu1 %v1183_v26 }
 0x1a0   : > { %1185 = vmatprep.subr.bf16.mxu1 %v1462_v13 }
 0x1a1   : > { %1160 = vmatpush1.bf16.msra.mxu0 %v1159_v28  ;;  %v626_v28 = vld [vmem:[#allocation5] sm:$0xff] }
 0x1a2   : > { %1162 = vmatprep.subr.bf16.mxu0 %v1161_v31 }
 0x1a3   : > { %1187 = vmatpush3.bf16.msra.mxu1 %v1186_v34 }
 0x1a4   : > { %1188 = vmatprep.subr.bf16.mxu1 %v1462_v13 }
 0x1a5   : > { %1164 = vmatpush1.bf16.msra.mxu0 %v1163_v37 }
 0x1a6   : > { %1166 = vmatprep.subr.bf16.mxu0 %v1165_v38 }
 0x1a7   : > { %1190 = vmatpush3.bf16.msra.mxu1 %v1189_v41 }
 0x1a8   : > { %1191 = vmatprep.subr.bf16.mxu1 %v1462_v13 }
 0x1a9   : > { %1168 = vmatpush1.bf16.msra.mxu0 %v1167_v43 }
 0x1aa   : > { %1170 = vmatprep.subr.bf16.mxu0 %v1169_v45 }
 0x1ab   : > { %1193 = vmatpush3.bf16.msra.mxu1 %v1192_v48 }
 0x1ac   : > { %1194 = vmatprep.subr.bf16.mxu1 %v1462_v13 }
 0x1ad   : > { %1172 = vmatpush1.bf16.msra.mxu0 %v1171_v51 }
 0x1af   : > { %1196 = vmatpush3.bf16.msra.mxu1 %v1195_v12 }
 0x1b0   : > { %522 = vmatmul.mubr.f32.vlgmr.msra.gmra.mrb[0].mxu0 %v450_v14 }
 0x1b2   : > { %1013 = vmatmul.mubr.f32.vlgmr.msra.gmra.mrb[0].mxu1 %v450_v14 }
 0x214   : > { %v633_v21 = vpop.permute.xlu0 %632 }
 0x218   : > { %v643_v24 = vpop.permute.xlu0 %642 }
 0x219   : > { %vm644_vm6 = vcmp.eq.s32.totalorder %v643_v24, 1 }
 0x283   : > { %v523_v1 = vpop.f32.mrb[0].mxu0 }
 0x284   : > { %v598_v61 = vadd.f32 %v523_v1, %v454_v54  ;;  %v525_v8 = vpop.f32.mrb[1].mxu0 }
 0x285   : > { %v605_v4 = vadd.f32 %v525_v8, %v455_v7  ;;  %v594_v0 = vpop.f32.mrb[0].mxu1 }
 0x286   : > { %v871_v6 = vmul.f32 -1.442695, %v598_v61  ;;  %v1014_v5 = vpop.f32.mrb[1].mxu1  ;;  %v618_v16 = vadd.f32 %v2120_v15, %v594_v0 }
 0x287   : > { %v872_v60 = vmul.f32 -1.442695, %v605_v4 }
 0x288   : > { %1305 = vpow2.f32 %v871_v6 }
 0x289   : > { %1307 = vpow2.f32 %v872_v60 }
 0x292   : > { %v1306_v13 = vpop.eup %1305 }
 0x293   : > { %v602_v63 = vadd.f32 1.0, %v1306_v13  ;;  %v1308_v9 = vpop.eup %1307 }
 0x294   : > { %v609_v10 = vadd.f32 1.0, %v1308_v9 }
 0x295   : > { %1309 = vrcp.f32 %v602_v63 }
 0x296   : > { %1311 = vrcp.f32 %v609_v10 }
 0x29f   : > { %v1310_v17 = vpop.eup %1309 }
 0x2a0   : > { %v619_v19 = vmul.f32 %v1310_v17, %v618_v16  ;;  %v1312_v22 = vpop.eup %1311 }
 0x2a1   : > { %v622_v23 = vsub.f32 1.0, %v1312_v22  ;;  %v624_v27 = vmul.f32 %v1312_v22, %v450_v14 }
 0x2a2   : > { %v620_v20 = vadd.f32 %v619_v19, %v456_v18 }
 0x2a4   : > { %1313 = vtanh.f32 %v620_v20 }
 0x2ae   : > { %v1314_v25 = vpop.eup %1313 }
 0x2af   : > { %v623_v26 = vmul.f32 %v1314_v25, %v622_v23 }
 0x2b1   : > { %v625_v2 = vadd.f32 %v624_v27, %v623_v26  ;;  %449 = sbr.rel (!%p446_p6) target bundleno = 398 (0x18e), region = 102 }
 0x2b3   : > { %v635_v29 = vmul.f32 %v633_v21, %v625_v2  ;;  %v645_v30 = vsel %vm644_vm6, %v625_v2, %v450_v14 }
 0x2b4   : > { %646 = vst [vmem:[#allocation4] sm:$0xff] %v645_v30 }
 0x2b5   : > { %v636_v31 = vadd.f32 %v635_v29, %v626_v28 }
 0x2b7   : > { %637 = vst [vmem:[#allocation5] sm:$0xff] %v636_v31 }
 0x2b8 PF:  { %v663_v32 = vld [vmem:[#allocation17 + $0x80] sm:$0xff]  ;;  %v664_v33 = vld [vmem:[#allocation17 + $0x88] sm:$0xff]  ;;  %v1466_v35 = vmov 0.0|0.0   ;;  %v665_v38 = vld [vmem:[#allocation17 + $0x90] sm:$0xff]  ;;  %vm1467_vm7 = vmmov 0   ;;  %v2121_v43 = vmov 0.0  }
 0x2b9   :  { %v647_v34 = vld [vmem:[#allocation17] sm:$0xff]  ;;  %1197 = vmatprep.subr.bf16.mxu1 %v1466_v35  ;;  %1221 = vmatprep.subr.bf16.mxu0 %v1466_v35  ;;  %v1198_v36 = vpack.c.bf16 %v664_v33, %v663_v32  ;;  %v648_v37 = vld [vmem:[#allocation17 + $0x8] sm:$0xff]  ;;  %v666_v39 = vld [vmem:[#allocation17 + $0x98] sm:$0xff]  ;;  %s821_s0 = sld [smem:[#allocation10]]  ;;  %s1468_s9 = smov [#allocation19]  }
 0x2ba   :  { %v1222_v40 = vpack.c.bf16 %v648_v37, %v647_v34  ;;  %v649_v41 = vld [vmem:[#allocation17 + $0x10] sm:$0xff]  ;;  %v650_v42 = vld [vmem:[#allocation17 + $0x18] sm:$0xff]  ;;  %1047 = vmatprep.mubr.msk.f32.mxu1 %vm1467_vm7, %v2121_v43  ;;  %1082 = vmatprep.mubr.msk.f32.mxu0 %vm1467_vm7, %v2121_v43  ;;  %v1201_v3 = vpack.c.bf16 %v666_v39, %v665_v38  ;;  %v667_v53 = vld [vmem:[#allocation17 + $0xa0] sm:$0xff]  ;;  %s835_s5 = sshll.u32 %s1468_s9, 4  ;;  %s836_s5 = int_to_ptr.vmem [resolvable:$true] %s835_s5 }
 0x2bb   :  { %1199 = vmatpush3.bf16.msra.mxu1 %v1198_v36  ;;  %v1225_v52 = vpack.c.bf16 %v650_v42, %v649_v41  ;;  %v668_v55 = vld [vmem:[#allocation17 + $0xa8] sm:$0xff]  ;;  %v651_v56 = vld [vmem:[#allocation17 + $0x20] sm:$0xff]  ;;  %v669_v44 = vld [vmem:[#allocation17 + $0xb0] sm:$0xff]  ;;  %s1403_s16 = scalar_lea.vmem %s836_s5, 128  ;;  %p1408_p8 = scmp.lt.s32.totalorder %s836_s5, %s836_s5 }
 0x2bc   :  { %1223 = vmatpush3.bf16.msra.mxu0 %v1222_v40  ;;  %1200 = vmatprep.subr.bf16.mxu1 %v1466_v35  ;;  %v652_v58 = vld [vmem:[#allocation17 + $0x28] sm:$0xff]  ;;  %v1204_v59 = vpack.c.bf16 %v668_v55, %v667_v53  ;;  %v670_v45 = vld [vmem:[#allocation17 + $0xb8] sm:$0xff]  ;;  %v653_v46 = vld [vmem:[#allocation17 + $0x30] sm:$0xff]  ;;  %p1404_p7 = scmp.ne.s32.totalorder %s836_s5, %s1403_s16  ;;  %p1409_p9 = scmp.lt.s32.totalorder %s1403_s16, %s1403_s16 }
 0x2bd   :  { %1224 = vmatprep.subr.bf16.mxu0 %v1466_v35  ;;  %v1228_v62 = vpack.c.bf16 %v652_v58, %v651_v56  ;;  %v654_v47 = vld [vmem:[#allocation17 + $0x38] sm:$0xff]  ;;  %v1207_v48 = vpack.c.bf16 %v670_v45, %v669_v44  ;;  %v671_v50 = vld [vmem:[#allocation17 + $0xc0] sm:$0xff]  ;;  %v672_v51 = vld [vmem:[#allocation17 + $0xc8] sm:$0xff] }
 0x2be   :  { %v1231_v49 = vpack.c.bf16 %v654_v47, %v653_v46  ;;  %v655_v57 = vld [vmem:[#allocation17 + $0x40] sm:$0xff]  ;;  %v656_v11 = vld [vmem:[#allocation17 + $0x48] sm:$0xff]  ;;  %v1210_v12 = vpack.c.bf16 %v672_v51, %v671_v50  ;;  %v673_v54 = vld [vmem:[#allocation17 + $0xd0] sm:$0xff]  ;;  %p1410_p10 = por %p1409_p9, %p1408_p8 }
 0x2bf   :  { %1202 = vmatpush3.bf16.msra.mxu1 %v1201_v3  ;;  %v1234_v14 = vpack.c.bf16 %v656_v11, %v655_v57  ;;  %v674_v7 = vld [vmem:[#allocation17 + $0xd8] sm:$0xff]  ;;  %v657_v1 = vld [vmem:[#allocation17 + $0x50] sm:$0xff]  ;;  %v675_v0 = vld [vmem:[#allocation17 + $0xe0] sm:$0xff]  ;;  %s824_s25 = ssub.f32 1.0, %s821_s0  ;;  %v822_v21 = vstv %s821_s0 }
 0x2c0   :  { %1226 = vmatpush3.bf16.msra.mxu0 %v1225_v52  ;;  %1203 = vmatprep.subr.bf16.mxu1 %v1466_v35  ;;  %v658_v61 = vld [vmem:[#allocation17 + $0x58] sm:$0xff]  ;;  %v1213_v8 = vpack.c.bf16 %v674_v7, %v673_v54  ;;  %v676_v6 = vld [vmem:[#allocation17 + $0xe8] sm:$0xff]  ;;  %v659_v5 = vld [vmem:[#allocation17 + $0x60] sm:$0xff]  ;;  %p1411_p11 = pnand %p1410_p10, %p1404_p7 }
 0x2c1   :  { %1227 = vmatprep.subr.bf16.mxu0 %v1466_v35  ;;  %v1237_v4 = vpack.c.bf16 %v658_v61, %v657_v1  ;;  %v660_v60 = vld [vmem:[#allocation17 + $0x68] sm:$0xff]  ;;  %v1216_v13 = vpack.c.bf16 %v676_v6, %v675_v0  ;;  %v677_v9 = vld [vmem:[#allocation17 + $0xf0] sm:$0xff]  ;;  %v678_v10 = vld [vmem:[#allocation17 + $0xf8] sm:$0xff]  ;;  %v825_v24 = vstv %s824_s25 }
 0x2c2   :  { %v1240_v63 = vpack.c.bf16 %v660_v60, %v659_v5  ;;  %v661_v15 = vld [vmem:[#allocation17 + $0x70] sm:$0xff]  ;;  %v662_v16 = vld [vmem:[#allocation17 + $0x78] sm:$0xff]  ;;  %v1219_v17 = vpack.c.bf16 %v678_v10, %v677_v9  ;;  %v680_v19 = vld [vmem:[#allocation4] sm:$0xff] }
 0x2c3   :  { %1205 = vmatpush3.bf16.msra.mxu1 %v1204_v59  ;;  %v1243_v18 = vpack.c.bf16 %v662_v16, %v661_v15  ;;  %v679_v20 = vld [vmem:[#allocation5] sm:$0xff] }
 0x2c4   :  { %1229 = vmatpush3.bf16.msra.mxu0 %v1228_v62  ;;  %1206 = vmatprep.subr.bf16.mxu1 %v1466_v35  ;;  %v2122_v2 = vld [vmem:[#allocation24_spill] sm:$0xff] }
 0x2c5   :  { %1230 = vmatprep.subr.bf16.mxu0 %v1466_v35  ;;  %v823_v28 = vmul.f32 %v822_v21, %v2122_v2 }
 0x2c7   :  { %1208 = vmatpush3.bf16.msra.mxu1 %v1207_v48 }
 0x2c8   :  { %1232 = vmatpush3.bf16.msra.mxu0 %v1231_v49  ;;  %1209 = vmatprep.subr.bf16.mxu1 %v1466_v35 }
 0x2c9   :  { %1233 = vmatprep.subr.bf16.mxu0 %v1466_v35 }
 0x2cb   :  { %1211 = vmatpush3.bf16.msra.mxu1 %v1210_v12 }
 0x2cc   :  { %1235 = vmatpush3.bf16.msra.mxu0 %v1234_v14  ;;  %1212 = vmatprep.subr.bf16.mxu1 %v1466_v35 }
 0x2cd   :  { %1236 = vmatprep.subr.bf16.mxu0 %v1466_v35 }
 0x2cf   :  { %1214 = vmatpush3.bf16.msra.mxu1 %v1213_v8 }
 0x2d0   :  { %1238 = vmatpush3.bf16.msra.mxu0 %v1237_v4  ;;  %1215 = vmatprep.subr.bf16.mxu1 %v1466_v35 }
 0x2d1   :  { %1239 = vmatprep.subr.bf16.mxu0 %v1466_v35 }
 0x2d3   :  { %1217 = vmatpush3.bf16.msra.mxu1 %v1216_v13 }
 0x2d4   :  { %1241 = vmatpush3.bf16.msra.mxu0 %v1240_v63  ;;  %1218 = vmatprep.subr.bf16.mxu1 %v1466_v35 }
 0x2d5   :  { %1242 = vmatprep.subr.bf16.mxu0 %v1466_v35 }
 0x2d7   :  { %1220 = vmatpush3.bf16.msra.mxu1 %v1219_v17 }
 0x2d8   :  { %1244 = vmatpush3.bf16.msra.mxu0 %v1243_v18 }
 0x2da   :  { %1048 = vmatmul.mubr.f32.vlgmr.msra.gmra.mrb[0].mxu1 %v680_v19 }
 0x2db   :  { %1083 = vmatmul.mubr.f32.vlgmr.msra.gmra.mrb[0].mxu0 %v679_v20 }
 0x3ad   :  { %v747_v22 = vpop.f32.mrb[0].mxu1 }
 0x3ae   :  { %v817_v23 = vpop.f32.mrb[0].mxu0  ;;  %v1049_v25 = vpop.f32.mrb[1].mxu1 }
 0x3af   :  { %v818_v26 = vadd.f32 %v817_v23, %v747_v22  ;;  %v1084_v27 = vpop.f32.mrb[1].mxu0 }
 0x3b1   :  { %v826_v29 = vmul.f32 %v825_v24, %v818_v26 }
 0x3b3   :  { %v827_v30 = vadd.f32 %v826_v29, %v823_v28 }
 0x3b5   :  { %828 = vst [vmem:[#allocation19] sm:$0xff] %v827_v30 }
 0x3b6   :  { %1414 = shalt.err (!%p1411_p11)
}
 0x3b7   :  { %s1415_s22 = scalar_lea.hbm %s2010_s10, 128 }
 0x3b8   :  { %p1416_p12 = scmp.ne.s32.totalorder %s2010_s10, %s1415_s22  ;;  %p1419_p13 = scmp.lt.u32.totalorder %s1415_s22, %s2010_s10 }
 0x3ba   :  { %p1421_p0 = pnand %p1419_p13, %p1416_p12 }
 0x3bc   :  { %1424 = shalt.err (!%p1421_p0)
}
 0x3bd   :  { %838 = dma.vmem_to_hbm [thread:$0]  %s836_s5, 128, %s2010_s10, [#allocation13]  }
 0x3be   :  { %1439 = dma.done.wait [#allocation13], 128  }
 0x3bf   :  { %1440 = vsyncadd [#allocation13], 4294967168 }
 0x3c0   :  { %842 = vsyncpa [#allocation12], 1 }
 0x3c1   :  { %843 = vsyncpa [#allocation15], 1 }
 0x3c2   :  { %844 = vsyncpa [#allocation18], 1 }
 0x3c3   :  { %845 = vsyncpa [#allocation13], 1 }

</bundles_post_ra>
